<compile_context>
chip_gen: v6e
topology: v6e:2x2x1
jax: 0.10.0
libtpu: 0.0.40
codegen_flags: <defaults>
</compile_context>

<pallas_src>
import functools

import jax
import jax.numpy as jnp
import numpy as np
from jax.experimental import pallas as pl
from jax.experimental.pallas import tpu as pltpu


def _rnn_classifier_kernel(x_ref,
                           wih0_ref, whh0_ref, b0_ref,
                           wih1_ref, whh1_ref, b1_ref,
                           wfc1_ref, bfc1_ref, wfc2_ref, bfc2_ref,
                           o_ref,
                           proj_ref,
                           *, lane_dense_out):
    # x_ref: (T, BT, IN) time-major slab for this batch tile.
    T = x_ref.shape[0]
    cdt = wih0_ref.dtype            # MXU operand dtype (bf16 fast path or f32)

    wih0, whh0, b0 = wih0_ref[...], whh0_ref[...], b0_ref[...]
    wih1, whh1, b1 = wih1_ref[...], whh1_ref[...], b1_ref[...]

    # ---- layer-0 input projection: one (BT, IN) x (IN, H) matmul per timestep.
    # Chunked per-t so each result stays inside the vreg file (no (T*BT, H)
    # spill); Python loop == full unroll with static proj_ref indices.
    for t in range(T):
        proj_ref[t] = (jnp.dot(x_ref[t].astype(cdt), wih0,
                               preferred_element_type=jnp.float32) + b0)

    # ---- layer-0 recurrence (serial latency chain).  As each h0_t is produced,
    # immediately compute layer-1's input projection for that timestep and store
    # it back in place (inter-layer Dropout(0.3) is identity in eval mode).
    h0 = jnp.tanh(proj_ref[0])                       # h_{-1} = 0
    proj_ref[0] = (jnp.dot(h0.astype(cdt), wih1,
                           preferred_element_type=jnp.float32) + b1)
    for t in range(1, T):
        h0 = jnp.tanh(proj_ref[t]
                      + jnp.dot(h0.astype(cdt), whh0,
                                preferred_element_type=jnp.float32))
        proj_ref[t] = (jnp.dot(h0.astype(cdt), wih1,
                               preferred_element_type=jnp.float32) + b1)

    # ---- layer-1 recurrence -> h_n[-1]
    h1 = jnp.tanh(proj_ref[0])
    for t in range(1, T):
        h1 = jnp.tanh(proj_ref[t]
                      + jnp.dot(h1.astype(cdt), whh1,
                                preferred_element_type=jnp.float32))

    # ---- classifier: Linear(64,128) -> ReLU -> Dropout(eval)=id -> Linear(128,1)
    # TODO(synk): training-mode dropout (stochastic masks) not implemented.
    z = jnp.dot(h1.astype(cdt), wfc1_ref[...],
                preferred_element_type=jnp.float32) + bfc1_ref[...]
    z = jnp.maximum(z, 0.0)
    if lane_dense_out:
        # Batch on lanes: transpose z (XLU) and emit a (1, BT) row so the output
        # store is an unmasked, 128-lane-wide vst per grid step.
        zt = jnp.transpose(z)                                   # (128, BT)
        y = jnp.dot(wfc2_ref[...], zt.astype(cdt),              # (1,128)@(128,BT)
                    preferred_element_type=jnp.float32) + bfc2_ref[...]
        o_ref[...] = y                                          # (1, BT)
    else:
        y = jnp.dot(z.astype(cdt), wfc2_ref[...],               # (BT,128)@(128,1)
                    preferred_element_type=jnp.float32) + bfc2_ref[...]
        o_ref[...] = y                                          # (BT, 1)


def _round_up(a, m):
    return ((a + m - 1) // m) * m


def _choose_tile(batch, requested):
    """Batch-tile size: multiple of 8, >= 2 grid steps whenever possible (so both
    v7x TensorCores get work), and a multiple of 128 for large batches so the
    output can be stored lane-dense."""
    if batch >= 256:
        req = max(128, (requested // 128) * 128)
        cap = max(128, ((batch // 2) // 128) * 128)
        return min(req, cap)
    req = max(8, (requested // 8) * 8)
    cap = _round_up(-(-batch // 2), 8) if batch > 8 else 8
    return min(req, cap)


def rnn_classifier_forward(x, params, *, b_tile=256, mxu_dtype=jnp.bfloat16):
    """x: (B, T, IN) float32 (batch_first, PyTorch layout).  Returns (B, 1) f32.

    mxu_dtype: dtype of the matmul operands (bf16 = native fast path on v6e/v7x;
    pass jnp.float32 for a full-f32 run).  All element-wise math stays f32."""
    B, T, IN = x.shape
    wih0, whh0, b0, wih1, whh1, b1, wfc1, bfc1, wfc2, bfc2 = params
    H = whh0.shape[0]

    b_tile = _choose_tile(B, b_tile)
    assert b_tile % 8 == 0 and b_tile >= 8, "batch tile must be a multiple of 8"
    b_pad = _round_up(B, b_tile)
    n_tiles = b_pad // b_tile
    lane_dense = (b_tile % 128 == 0)

    if b_pad != B:
        x = jnp.pad(x, ((0, b_pad - B), (0, 0), (0, 0)))
    # Time-major slab so every recurrence step reads a contiguous (BT, IN) chunk.
    # TODO(synk): for very large B this wrapper transpose is one extra HBM pass
    # over x; it could be folded into the kernel with an in-VMEM relayout.
    x_tm = jnp.transpose(x, (1, 0, 2))

    # MXU operands in mxu_dtype; biases stay f32.  fc2 weight is re-oriented to a
    # (1, 128) row for the lane-dense output path.
    wfc2_k = wfc2.reshape(1, -1) if lane_dense else wfc2
    kparams = (wih0.astype(mxu_dtype), whh0.astype(mxu_dtype), b0,
               wih1.astype(mxu_dtype), whh1.astype(mxu_dtype), b1,
               wfc1.astype(mxu_dtype), bfc1,
               wfc2_k.astype(mxu_dtype), bfc2)

    def full_spec(a):
        nd = a.ndim
        return pl.BlockSpec(a.shape, lambda b, nd=nd: (0,) * nd)

    in_specs = [pl.BlockSpec((T, b_tile, IN), lambda b: (0, b, 0))]
    in_specs += [full_spec(p) for p in kparams]

    if lane_dense:
        out_shape = jax.ShapeDtypeStruct((1, b_pad), jnp.float32)
        out_spec = pl.BlockSpec((1, b_tile), lambda b: (0, b))
    else:
        out_shape = jax.ShapeDtypeStruct((b_pad, 1), jnp.float32)
        out_spec = pl.BlockSpec((b_tile, 1), lambda b: (b, 0))

    kernel = functools.partial(_rnn_classifier_kernel, lane_dense_out=lane_dense)

    out = pl.pallas_call(
        kernel,
        out_shape=out_shape,
        grid=(n_tiles,),
        in_specs=in_specs,
        out_specs=out_spec,
        scratch_shapes=[pltpu.VMEM((T, b_tile, H), jnp.float32)],  # shared proj slab
        compiler_params=pltpu.CompilerParams(
            dimension_semantics=("parallel",)),   # disjoint per-tile output blocks
    )(x_tm, *kparams)

    if lane_dense:
        out = out.reshape(b_pad, 1)
    return out[:B]


def make_params(key, input_size=17, hidden_size=64):
    """Deterministic parameters in PyTorch shapes, converted to kernel layout:
    weights transposed to (in, out); RNN biases combined (b_ih + b_hh)."""
    ks = jax.random.split(key, 12)
    s = 0.1

    w_ih0 = jax.random.normal(ks[0], (hidden_size, input_size), jnp.float32) * s
    w_hh0 = jax.random.normal(ks[1], (hidden_size, hidden_size), jnp.float32) * s
    b_ih0 = jax.random.normal(ks[2], (hidden_size,), jnp.float32) * s
    b_hh0 = jax.random.normal(ks[3], (hidden_size,), jnp.float32) * s
    w_ih1 = jax.random.normal(ks[4], (hidden_size, hidden_size), jnp.float32) * s
    w_hh1 = jax.random.normal(ks[5], (hidden_size, hidden_size), jnp.float32) * s
    b_ih1 = jax.random.normal(ks[6], (hidden_size,), jnp.float32) * s
    b_hh1 = jax.random.normal(ks[7], (hidden_size,), jnp.float32) * s
    w_fc1 = jax.random.normal(ks[8], (128, hidden_size), jnp.float32) * 0.05
    b_fc1 = jax.random.normal(ks[9], (128,), jnp.float32) * 0.05
    w_fc2 = jax.random.normal(ks[10], (1, 128), jnp.float32) * 0.05
    b_fc2 = jax.random.normal(ks[11], (1,), jnp.float32) * 0.05

    return (w_ih0.T, w_hh0.T, (b_ih0 + b_hh0).reshape(1, hidden_size),
            w_ih1.T, w_hh1.T, (b_ih1 + b_hh1).reshape(1, hidden_size),
            w_fc1.T, b_fc1.reshape(1, 128),
            w_fc2.T, b_fc2.reshape(1, 1))


def rnn_classifier_reference(x, params):
    """Pure-JAX reference mirroring PyTorch eval-mode semantics."""
    wih0, whh0, b0, wih1, whh1, b1, wfc1, bfc1, wfc2, bfc2 = params
    hp = jax.lax.Precision.HIGHEST
    B, T, _ = x.shape
    H = whh0.shape[0]
    h0 = jnp.zeros((B, H), jnp.float32)
    h1 = jnp.zeros((B, H), jnp.float32)
    for t in range(T):
        h0 = jnp.tanh(jnp.dot(x[:, t, :], wih0, precision=hp)
                      + jnp.dot(h0, whh0, precision=hp) + b0)
        h1 = jnp.tanh(jnp.dot(h0, wih1, precision=hp)
                      + jnp.dot(h1, whh1, precision=hp) + b1)
    z = jnp.maximum(jnp.dot(h1, wfc1, precision=hp) + bfc1, 0.0)
    return jnp.dot(z, wfc2, precision=hp) + bfc2


if __name__ == "__main__":
    key = jax.random.PRNGKey(0)
    pkey, xkey = jax.random.split(key)
    params = make_params(pkey)
    T, IN = 12, 17

    # Small batch: column-output path, tile=8, 2-step grid.
    B = 16
    x = jax.random.normal(xkey, (B, T, IN), jnp.float32)
    ref = rnn_classifier_reference(x, params)

    out_f32 = jax.block_until_ready(
        rnn_classifier_forward(x, params, mxu_dtype=jnp.float32))
    assert out_f32.shape == (B, 1) and out_f32.dtype == jnp.float32
    np.testing.assert_allclose(np.asarray(out_f32), np.asarray(ref),
                               rtol=1e-3, atol=1e-3)

    out_bf16 = jax.block_until_ready(rnn_classifier_forward(x, params))
    np.testing.assert_allclose(np.asarray(out_bf16), np.asarray(ref),
                               rtol=2e-2, atol=2e-2)

    # Larger batch: lane-dense (1, b_pad) output path, 128-row tiles, 2-step
    # "parallel" grid (v7x megacore sharding), bf16 MXU operands.
    B2 = 256
    x2 = jax.random.normal(jax.random.fold_in(xkey, 1), (B2, T, IN), jnp.float32)
    ref2 = rnn_classifier_reference(x2, params)
    out2 = jax.block_until_ready(rnn_classifier_forward(x2, params))
    assert out2.shape == (B2, 1)
    np.testing.assert_allclose(np.asarray(out2), np.asarray(ref2),
                               rtol=2e-2, atol=2e-2)

    print("KERNEL_OK")
</pallas_src>

<mosaic_0001>
module attributes {stable_mosaic.version = 11 : i64} {
  func.func @_rnn_classifier_kernel(%arg0: i32, %arg1: memref<12x8x17xf32, #tpu.memory_space<vmem>>, %arg2: memref<17x64xf32, #tpu.memory_space<vmem>>, %arg3: memref<64x64xf32, #tpu.memory_space<vmem>>, %arg4: memref<1x64xf32, #tpu.memory_space<vmem>>, %arg5: memref<64x64xf32, #tpu.memory_space<vmem>>, %arg6: memref<64x64xf32, #tpu.memory_space<vmem>>, %arg7: memref<1x64xf32, #tpu.memory_space<vmem>>, %arg8: memref<64x128xf32, #tpu.memory_space<vmem>>, %arg9: memref<1x128xf32, #tpu.memory_space<vmem>>, %arg10: memref<128x1xf32, #tpu.memory_space<vmem>>, %arg11: memref<1x1xf32, #tpu.memory_space<vmem>>, %arg12: memref<8x1xf32, #tpu.memory_space<vmem>>, %arg13: memref<12x8x64xf32, #tpu.memory_space<vmem>>) attributes {dimension_semantics = [#tpu.dimension_semantics<parallel>], iteration_bounds = array<i64: 2>, scalar_prefetch = 0 : i64, scratch_operands = 1 : i64, tpu.core_type = #tpu.core_type<tc>, window_params = [{transform_indices = @transform_0, window_bounds = array<i64: 12, 8, 17>}, {pipeline_mode = #tpu.pipeline_mode<synchronous>, transform_indices = @transform_1, window_bounds = array<i64: 17, 64>}, {pipeline_mode = #tpu.pipeline_mode<synchronous>, transform_indices = @transform_2, window_bounds = array<i64: 64, 64>}, {pipeline_mode = #tpu.pipeline_mode<synchronous>, transform_indices = @transform_3, window_bounds = array<i64: 1, 64>}, {pipeline_mode = #tpu.pipeline_mode<synchronous>, transform_indices = @transform_4, window_bounds = array<i64: 64, 64>}, {pipeline_mode = #tpu.pipeline_mode<synchronous>, transform_indices = @transform_5, window_bounds = array<i64: 64, 64>}, {pipeline_mode = #tpu.pipeline_mode<synchronous>, transform_indices = @transform_6, window_bounds = array<i64: 1, 64>}, {pipeline_mode = #tpu.pipeline_mode<synchronous>, transform_indices = @transform_7, window_bounds = array<i64: 64, 128>}, {pipeline_mode = #tpu.pipeline_mode<synchronous>, transform_indices = @transform_8, window_bounds = array<i64: 1, 128>}, {pipeline_mode = #tpu.pipeline_mode<synchronous>, transform_indices = @transform_9, window_bounds = array<i64: 128, 1>}, {pipeline_mode = #tpu.pipeline_mode<synchronous>, transform_indices = @transform_10, window_bounds = array<i64: 1, 1>}, {transform_indices = @transform_11, window_bounds = array<i64: 8, 1>}]} {
    %c0 = arith.constant 0 : index
    %c0_0 = arith.constant 0 : index
    %0 = vector.load %arg2[%c0, %c0_0] : memref<17x64xf32, #tpu.memory_space<vmem>>, vector<17x64xf32>
    %c0_1 = arith.constant 0 : index
    %c0_2 = arith.constant 0 : index
    %1 = vector.load %arg3[%c0_1, %c0_2] : memref<64x64xf32, #tpu.memory_space<vmem>>, vector<64x64xf32>
    %c0_3 = arith.constant 0 : index
    %c0_4 = arith.constant 0 : index
    %2 = vector.load %arg4[%c0_3, %c0_4] : memref<1x64xf32, #tpu.memory_space<vmem>>, vector<1x64xf32>
    %c0_5 = arith.constant 0 : index
    %c0_6 = arith.constant 0 : index
    %3 = vector.load %arg5[%c0_5, %c0_6] : memref<64x64xf32, #tpu.memory_space<vmem>>, vector<64x64xf32>
    %c0_7 = arith.constant 0 : index
    %c0_8 = arith.constant 0 : index
    %4 = vector.load %arg6[%c0_7, %c0_8] : memref<64x64xf32, #tpu.memory_space<vmem>>, vector<64x64xf32>
    %c0_9 = arith.constant 0 : index
    %c0_10 = arith.constant 0 : index
    %5 = vector.load %arg7[%c0_9, %c0_10] : memref<1x64xf32, #tpu.memory_space<vmem>>, vector<1x64xf32>
    %c0_11 = arith.constant 0 : index
    %c0_12 = arith.constant 0 : index
    %c0_13 = arith.constant 0 : index
    %6 = vector.load %arg1[%c0_11, %c0_12, %c0_13] : memref<12x8x17xf32, #tpu.memory_space<vmem>>, vector<1x8x17xf32>
    %7 = vector.shape_cast %6 : vector<1x8x17xf32> to vector<8x17xf32>
    %cst = arith.constant dense<0.000000e+00> : vector<8x64xf32>
    %8 = tpu.matmul %7, %0, %cst {dimension_numbers = #tpu.dot_dimension_numbers<[1], [0], [0], [1], [0, 0, 1, 1], [], []>} : vector<8x17xf32>, vector<17x64xf32>, vector<8x64xf32> -> vector<8x64xf32>
    %9 = vector.broadcast %2 : vector<1x64xf32> to vector<8x64xf32>
    %10 = arith.addf %8, %9 : vector<8x64xf32>
    %c0_14 = arith.constant 0 : index
    %c0_15 = arith.constant 0 : index
    %c0_16 = arith.constant 0 : index
    %11 = vector.load %arg13[%c0_14, %c0_15, %c0_16] : memref<12x8x64xf32, #tpu.memory_space<vmem>>, vector<1x8x64xf32>
    %12 = vector.shape_cast %11 : vector<1x8x64xf32> to vector<8x64xf32>
    %13 = vector.shape_cast %10 : vector<8x64xf32> to vector<1x8x64xf32>
    tpu.vector_store %arg13[%c0_14, %c0_15, %c0_16], %13 {strides = array<i32>} : memref<12x8x64xf32, #tpu.memory_space<vmem>>, vector<1x8x64xf32>,
    %c1 = arith.constant 1 : index
    %c0_17 = arith.constant 0 : index
    %c0_18 = arith.constant 0 : index
    %14 = vector.load %arg1[%c1, %c0_17, %c0_18] : memref<12x8x17xf32, #tpu.memory_space<vmem>>, vector<1x8x17xf32>
    %15 = vector.shape_cast %14 : vector<1x8x17xf32> to vector<8x17xf32>
    %cst_19 = arith.constant dense<0.000000e+00> : vector<8x64xf32>
    %16 = tpu.matmul %15, %0, %cst_19 {dimension_numbers = #tpu.dot_dimension_numbers<[1], [0], [0], [1], [0, 0, 1, 1], [], []>} : vector<8x17xf32>, vector<17x64xf32>, vector<8x64xf32> -> vector<8x64xf32>
    %17 = vector.broadcast %2 : vector<1x64xf32> to vector<8x64xf32>
    %18 = arith.addf %16, %17 : vector<8x64xf32>
    %c1_20 = arith.constant 1 : index
    %c0_21 = arith.constant 0 : index
    %c0_22 = arith.constant 0 : index
    %19 = vector.load %arg13[%c1_20, %c0_21, %c0_22] : memref<12x8x64xf32, #tpu.memory_space<vmem>>, vector<1x8x64xf32>
    %20 = vector.shape_cast %19 : vector<1x8x64xf32> to vector<8x64xf32>
    %21 = vector.shape_cast %18 : vector<8x64xf32> to vector<1x8x64xf32>
    tpu.vector_store %arg13[%c1_20, %c0_21, %c0_22], %21 {strides = array<i32>} : memref<12x8x64xf32, #tpu.memory_space<vmem>>, vector<1x8x64xf32>,
    %c2 = arith.constant 2 : index
    %c0_23 = arith.constant 0 : index
    %c0_24 = arith.constant 0 : index
    %22 = vector.load %arg1[%c2, %c0_23, %c0_24] : memref<12x8x17xf32, #tpu.memory_space<vmem>>, vector<1x8x17xf32>
    %23 = vector.shape_cast %22 : vector<1x8x17xf32> to vector<8x17xf32>
    %cst_25 = arith.constant dense<0.000000e+00> : vector<8x64xf32>
    %24 = tpu.matmul %23, %0, %cst_25 {dimension_numbers = #tpu.dot_dimension_numbers<[1], [0], [0], [1], [0, 0, 1, 1], [], []>} : vector<8x17xf32>, vector<17x64xf32>, vector<8x64xf32> -> vector<8x64xf32>
    %25 = vector.broadcast %2 : vector<1x64xf32> to vector<8x64xf32>
    %26 = arith.addf %24, %25 : vector<8x64xf32>
    %c2_26 = arith.constant 2 : index
    %c0_27 = arith.constant 0 : index
    %c0_28 = arith.constant 0 : index
    %27 = vector.load %arg13[%c2_26, %c0_27, %c0_28] : memref<12x8x64xf32, #tpu.memory_space<vmem>>, vector<1x8x64xf32>
    %28 = vector.shape_cast %27 : vector<1x8x64xf32> to vector<8x64xf32>
    %29 = vector.shape_cast %26 : vector<8x64xf32> to vector<1x8x64xf32>
    tpu.vector_store %arg13[%c2_26, %c0_27, %c0_28], %29 {strides = array<i32>} : memref<12x8x64xf32, #tpu.memory_space<vmem>>, vector<1x8x64xf32>,
    %c3 = arith.constant 3 : index
    %c0_29 = arith.constant 0 : index
    %c0_30 = arith.constant 0 : index
    %30 = vector.load %arg1[%c3, %c0_29, %c0_30] : memref<12x8x17xf32, #tpu.memory_space<vmem>>, vector<1x8x17xf32>
    %31 = vector.shape_cast %30 : vector<1x8x17xf32> to vector<8x17xf32>
    %cst_31 = arith.constant dense<0.000000e+00> : vector<8x64xf32>
    %32 = tpu.matmul %31, %0, %cst_31 {dimension_numbers = #tpu.dot_dimension_numbers<[1], [0], [0], [1], [0, 0, 1, 1], [], []>} : vector<8x17xf32>, vector<17x64xf32>, vector<8x64xf32> -> vector<8x64xf32>
    %33 = vector.broadcast %2 : vector<1x64xf32> to vector<8x64xf32>
    %34 = arith.addf %32, %33 : vector<8x64xf32>
    %c3_32 = arith.constant 3 : index
    %c0_33 = arith.constant 0 : index
    %c0_34 = arith.constant 0 : index
    %35 = vector.load %arg13[%c3_32, %c0_33, %c0_34] : memref<12x8x64xf32, #tpu.memory_space<vmem>>, vector<1x8x64xf32>
    %36 = vector.shape_cast %35 : vector<1x8x64xf32> to vector<8x64xf32>
    %37 = vector.shape_cast %34 : vector<8x64xf32> to vector<1x8x64xf32>
    tpu.vector_store %arg13[%c3_32, %c0_33, %c0_34], %37 {strides = array<i32>} : memref<12x8x64xf32, #tpu.memory_space<vmem>>, vector<1x8x64xf32>,
    %c4 = arith.constant 4 : index
    %c0_35 = arith.constant 0 : index
    %c0_36 = arith.constant 0 : index
    %38 = vector.load %arg1[%c4, %c0_35, %c0_36] : memref<12x8x17xf32, #tpu.memory_space<vmem>>, vector<1x8x17xf32>
    %39 = vector.shape_cast %38 : vector<1x8x17xf32> to vector<8x17xf32>
    %cst_37 = arith.constant dense<0.000000e+00> : vector<8x64xf32>
    %40 = tpu.matmul %39, %0, %cst_37 {dimension_numbers = #tpu.dot_dimension_numbers<[1], [0], [0], [1], [0, 0, 1, 1], [], []>} : vector<8x17xf32>, vector<17x64xf32>, vector<8x64xf32> -> vector<8x64xf32>
    %41 = vector.broadcast %2 : vector<1x64xf32> to vector<8x64xf32>
    %42 = arith.addf %40, %41 : vector<8x64xf32>
    %c4_38 = arith.constant 4 : index
    %c0_39 = arith.constant 0 : index
    %c0_40 = arith.constant 0 : index
    %43 = vector.load %arg13[%c4_38, %c0_39, %c0_40] : memref<12x8x64xf32, #tpu.memory_space<vmem>>, vector<1x8x64xf32>
    %44 = vector.shape_cast %43 : vector<1x8x64xf32> to vector<8x64xf32>
    %45 = vector.shape_cast %42 : vector<8x64xf32> to vector<1x8x64xf32>
    tpu.vector_store %arg13[%c4_38, %c0_39, %c0_40], %45 {strides = array<i32>} : memref<12x8x64xf32, #tpu.memory_space<vmem>>, vector<1x8x64xf32>,
    %c5 = arith.constant 5 : index
    %c0_41 = arith.constant 0 : index
    %c0_42 = arith.constant 0 : index
    %46 = vector.load %arg1[%c5, %c0_41, %c0_42] : memref<12x8x17xf32, #tpu.memory_space<vmem>>, vector<1x8x17xf32>
    %47 = vector.shape_cast %46 : vector<1x8x17xf32> to vector<8x17xf32>
    %cst_43 = arith.constant dense<0.000000e+00> : vector<8x64xf32>
    %48 = tpu.matmul %47, %0, %cst_43 {dimension_numbers = #tpu.dot_dimension_numbers<[1], [0], [0], [1], [0, 0, 1, 1], [], []>} : vector<8x17xf32>, vector<17x64xf32>, vector<8x64xf32> -> vector<8x64xf32>
    %49 = vector.broadcast %2 : vector<1x64xf32> to vector<8x64xf32>
    %50 = arith.addf %48, %49 : vector<8x64xf32>
    %c5_44 = arith.constant 5 : index
    %c0_45 = arith.constant 0 : index
    %c0_46 = arith.constant 0 : index
    %51 = vector.load %arg13[%c5_44, %c0_45, %c0_46] : memref<12x8x64xf32, #tpu.memory_space<vmem>>, vector<1x8x64xf32>
    %52 = vector.shape_cast %51 : vector<1x8x64xf32> to vector<8x64xf32>
    %53 = vector.shape_cast %50 : vector<8x64xf32> to vector<1x8x64xf32>
    tpu.vector_store %arg13[%c5_44, %c0_45, %c0_46], %53 {strides = array<i32>} : memref<12x8x64xf32, #tpu.memory_space<vmem>>, vector<1x8x64xf32>,
    %c6 = arith.constant 6 : index
    %c0_47 = arith.constant 0 : index
    %c0_48 = arith.constant 0 : index
    %54 = vector.load %arg1[%c6, %c0_47, %c0_48] : memref<12x8x17xf32, #tpu.memory_space<vmem>>, vector<1x8x17xf32>
    %55 = vector.shape_cast %54 : vector<1x8x17xf32> to vector<8x17xf32>
    %cst_49 = arith.constant dense<0.000000e+00> : vector<8x64xf32>
    %56 = tpu.matmul %55, %0, %cst_49 {dimension_numbers = #tpu.dot_dimension_numbers<[1], [0], [0], [1], [0, 0, 1, 1], [], []>} : vector<8x17xf32>, vector<17x64xf32>, vector<8x64xf32> -> vector<8x64xf32>
    %57 = vector.broadcast %2 : vector<1x64xf32> to vector<8x64xf32>
    %58 = arith.addf %56, %57 : vector<8x64xf32>
    %c6_50 = arith.constant 6 : index
    %c0_51 = arith.constant 0 : index
    %c0_52 = arith.constant 0 : index
    %59 = vector.load %arg13[%c6_50, %c0_51, %c0_52] : memref<12x8x64xf32, #tpu.memory_space<vmem>>, vector<1x8x64xf32>
    %60 = vector.shape_cast %59 : vector<1x8x64xf32> to vector<8x64xf32>
    %61 = vector.shape_cast %58 : vector<8x64xf32> to vector<1x8x64xf32>
    tpu.vector_store %arg13[%c6_50, %c0_51, %c0_52], %61 {strides = array<i32>} : memref<12x8x64xf32, #tpu.memory_space<vmem>>, vector<1x8x64xf32>,
    %c7 = arith.constant 7 : index
    %c0_53 = arith.constant 0 : index
    %c0_54 = arith.constant 0 : index
    %62 = vector.load %arg1[%c7, %c0_53, %c0_54] : memref<12x8x17xf32, #tpu.memory_space<vmem>>, vector<1x8x17xf32>
    %63 = vector.shape_cast %62 : vector<1x8x17xf32> to vector<8x17xf32>
    %cst_55 = arith.constant dense<0.000000e+00> : vector<8x64xf32>
    %64 = tpu.matmul %63, %0, %cst_55 {dimension_numbers = #tpu.dot_dimension_numbers<[1], [0], [0], [1], [0, 0, 1, 1], [], []>} : vector<8x17xf32>, vector<17x64xf32>, vector<8x64xf32> -> vector<8x64xf32>
    %65 = vector.broadcast %2 : vector<1x64xf32> to vector<8x64xf32>
    %66 = arith.addf %64, %65 : vector<8x64xf32>
    %c7_56 = arith.constant 7 : index
    %c0_57 = arith.constant 0 : index
    %c0_58 = arith.constant 0 : index
    %67 = vector.load %arg13[%c7_56, %c0_57, %c0_58] : memref<12x8x64xf32, #tpu.memory_space<vmem>>, vector<1x8x64xf32>
    %68 = vector.shape_cast %67 : vector<1x8x64xf32> to vector<8x64xf32>
    %69 = vector.shape_cast %66 : vector<8x64xf32> to vector<1x8x64xf32>
    tpu.vector_store %arg13[%c7_56, %c0_57, %c0_58], %69 {strides = array<i32>} : memref<12x8x64xf32, #tpu.memory_space<vmem>>, vector<1x8x64xf32>,
    %c8 = arith.constant 8 : index
    %c0_59 = arith.constant 0 : index
    %c0_60 = arith.constant 0 : index
    %70 = vector.load %arg1[%c8, %c0_59, %c0_60] : memref<12x8x17xf32, #tpu.memory_space<vmem>>, vector<1x8x17xf32>
    %71 = vector.shape_cast %70 : vector<1x8x17xf32> to vector<8x17xf32>
    %cst_61 = arith.constant dense<0.000000e+00> : vector<8x64xf32>
    %72 = tpu.matmul %71, %0, %cst_61 {dimension_numbers = #tpu.dot_dimension_numbers<[1], [0], [0], [1], [0, 0, 1, 1], [], []>} : vector<8x17xf32>, vector<17x64xf32>, vector<8x64xf32> -> vector<8x64xf32>
    %73 = vector.broadcast %2 : vector<1x64xf32> to vector<8x64xf32>
    %74 = arith.addf %72, %73 : vector<8x64xf32>
    %c8_62 = arith.constant 8 : index
    %c0_63 = arith.constant 0 : index
    %c0_64 = arith.constant 0 : index
    %75 = vector.load %arg13[%c8_62, %c0_63, %c0_64] : memref<12x8x64xf32, #tpu.memory_space<vmem>>, vector<1x8x64xf32>
    %76 = vector.shape_cast %75 : vector<1x8x64xf32> to vector<8x64xf32>
    %77 = vector.shape_cast %74 : vector<8x64xf32> to vector<1x8x64xf32>
    tpu.vector_store %arg13[%c8_62, %c0_63, %c0_64], %77 {strides = array<i32>} : memref<12x8x64xf32, #tpu.memory_space<vmem>>, vector<1x8x64xf32>,
    %c9 = arith.constant 9 : index
    %c0_65 = arith.constant 0 : index
    %c0_66 = arith.constant 0 : index
    %78 = vector.load %arg1[%c9, %c0_65, %c0_66] : memref<12x8x17xf32, #tpu.memory_space<vmem>>, vector<1x8x17xf32>
    %79 = vector.shape_cast %78 : vector<1x8x17xf32> to vector<8x17xf32>
    %cst_67 = arith.constant dense<0.000000e+00> : vector<8x64xf32>
    %80 = tpu.matmul %79, %0, %cst_67 {dimension_numbers = #tpu.dot_dimension_numbers<[1], [0], [0], [1], [0, 0, 1, 1], [], []>} : vector<8x17xf32>, vector<17x64xf32>, vector<8x64xf32> -> vector<8x64xf32>
    %81 = vector.broadcast %2 : vector<1x64xf32> to vector<8x64xf32>
    %82 = arith.addf %80, %81 : vector<8x64xf32>
    %c9_68 = arith.constant 9 : index
    %c0_69 = arith.constant 0 : index
    %c0_70 = arith.constant 0 : index
    %83 = vector.load %arg13[%c9_68, %c0_69, %c0_70] : memref<12x8x64xf32, #tpu.memory_space<vmem>>, vector<1x8x64xf32>
    %84 = vector.shape_cast %83 : vector<1x8x64xf32> to vector<8x64xf32>
    %85 = vector.shape_cast %82 : vector<8x64xf32> to vector<1x8x64xf32>
    tpu.vector_store %arg13[%c9_68, %c0_69, %c0_70], %85 {strides = array<i32>} : memref<12x8x64xf32, #tpu.memory_space<vmem>>, vector<1x8x64xf32>,
    %c10 = arith.constant 10 : index
    %c0_71 = arith.constant 0 : index
    %c0_72 = arith.constant 0 : index
    %86 = vector.load %arg1[%c10, %c0_71, %c0_72] : memref<12x8x17xf32, #tpu.memory_space<vmem>>, vector<1x8x17xf32>
    %87 = vector.shape_cast %86 : vector<1x8x17xf32> to vector<8x17xf32>
    %cst_73 = arith.constant dense<0.000000e+00> : vector<8x64xf32>
    %88 = tpu.matmul %87, %0, %cst_73 {dimension_numbers = #tpu.dot_dimension_numbers<[1], [0], [0], [1], [0, 0, 1, 1], [], []>} : vector<8x17xf32>, vector<17x64xf32>, vector<8x64xf32> -> vector<8x64xf32>
    %89 = vector.broadcast %2 : vector<1x64xf32> to vector<8x64xf32>
    %90 = arith.addf %88, %89 : vector<8x64xf32>
    %c10_74 = arith.constant 10 : index
    %c0_75 = arith.constant 0 : index
    %c0_76 = arith.constant 0 : index
    %91 = vector.load %arg13[%c10_74, %c0_75, %c0_76] : memref<12x8x64xf32, #tpu.memory_space<vmem>>, vector<1x8x64xf32>
    %92 = vector.shape_cast %91 : vector<1x8x64xf32> to vector<8x64xf32>
    %93 = vector.shape_cast %90 : vector<8x64xf32> to vector<1x8x64xf32>
    tpu.vector_store %arg13[%c10_74, %c0_75, %c0_76], %93 {strides = array<i32>} : memref<12x8x64xf32, #tpu.memory_space<vmem>>, vector<1x8x64xf32>,
    %c11 = arith.constant 11 : index
    %c0_77 = arith.constant 0 : index
    %c0_78 = arith.constant 0 : index
    %94 = vector.load %arg1[%c11, %c0_77, %c0_78] : memref<12x8x17xf32, #tpu.memory_space<vmem>>, vector<1x8x17xf32>
    %95 = vector.shape_cast %94 : vector<1x8x17xf32> to vector<8x17xf32>
    %cst_79 = arith.constant dense<0.000000e+00> : vector<8x64xf32>
    %96 = tpu.matmul %95, %0, %cst_79 {dimension_numbers = #tpu.dot_dimension_numbers<[1], [0], [0], [1], [0, 0, 1, 1], [], []>} : vector<8x17xf32>, vector<17x64xf32>, vector<8x64xf32> -> vector<8x64xf32>
    %97 = vector.broadcast %2 : vector<1x64xf32> to vector<8x64xf32>
    %98 = arith.addf %96, %97 : vector<8x64xf32>
    %c11_80 = arith.constant 11 : index
    %c0_81 = arith.constant 0 : index
    %c0_82 = arith.constant 0 : index
    %99 = vector.load %arg13[%c11_80, %c0_81, %c0_82] : memref<12x8x64xf32, #tpu.memory_space<vmem>>, vector<1x8x64xf32>
    %100 = vector.shape_cast %99 : vector<1x8x64xf32> to vector<8x64xf32>
    %101 = vector.shape_cast %98 : vector<8x64xf32> to vector<1x8x64xf32>
    tpu.vector_store %arg13[%c11_80, %c0_81, %c0_82], %101 {strides = array<i32>} : memref<12x8x64xf32, #tpu.memory_space<vmem>>, vector<1x8x64xf32>,
    %c0_83 = arith.constant 0 : index
    %c0_84 = arith.constant 0 : index
    %c0_85 = arith.constant 0 : index
    %102 = vector.load %arg13[%c0_83, %c0_84, %c0_85] : memref<12x8x64xf32, #tpu.memory_space<vmem>>, vector<1x8x64xf32>
    %103 = vector.shape_cast %102 : vector<1x8x64xf32> to vector<8x64xf32>
    %104 = math.tanh %103 : vector<8x64xf32>
    %cst_86 = arith.constant dense<0.000000e+00> : vector<8x64xf32>
    %105 = tpu.matmul %104, %3, %cst_86 {dimension_numbers = #tpu.dot_dimension_numbers<[1], [0], [0], [1], [0, 0, 1, 1], [], []>} : vector<8x64xf32>, vector<64x64xf32>, vector<8x64xf32> -> vector<8x64xf32>
    %106 = vector.broadcast %5 : vector<1x64xf32> to vector<8x64xf32>
    %107 = arith.addf %105, %106 : vector<8x64xf32>
    %c0_87 = arith.constant 0 : index
    %c0_88 = arith.constant 0 : index
    %c0_89 = arith.constant 0 : index
    %108 = vector.load %arg13[%c0_87, %c0_88, %c0_89] : memref<12x8x64xf32, #tpu.memory_space<vmem>>, vector<1x8x64xf32>
    %109 = vector.shape_cast %108 : vector<1x8x64xf32> to vector<8x64xf32>
    %110 = vector.shape_cast %107 : vector<8x64xf32> to vector<1x8x64xf32>
    tpu.vector_store %arg13[%c0_87, %c0_88, %c0_89], %110 {strides = array<i32>} : memref<12x8x64xf32, #tpu.memory_space<vmem>>, vector<1x8x64xf32>,
    %c1_90 = arith.constant 1 : index
    %c0_91 = arith.constant 0 : index
    %c0_92 = arith.constant 0 : index
    %111 = vector.load %arg13[%c1_90, %c0_91, %c0_92] : memref<12x8x64xf32, #tpu.memory_space<vmem>>, vector<1x8x64xf32>
    %112 = vector.shape_cast %111 : vector<1x8x64xf32> to vector<8x64xf32>
    %cst_93 = arith.constant dense<0.000000e+00> : vector<8x64xf32>
    %113 = tpu.matmul %104, %1, %cst_93 {dimension_numbers = #tpu.dot_dimension_numbers<[1], [0], [0], [1], [0, 0, 1, 1], [], []>} : vector<8x64xf32>, vector<64x64xf32>, vector<8x64xf32> -> vector<8x64xf32>
    %114 = arith.addf %112, %113 : vector<8x64xf32>
    %115 = math.tanh %114 : vector<8x64xf32>
    %cst_94 = arith.constant dense<0.000000e+00> : vector<8x64xf32>
    %116 = tpu.matmul %115, %3, %cst_94 {dimension_numbers = #tpu.dot_dimension_numbers<[1], [0], [0], [1], [0, 0, 1, 1], [], []>} : vector<8x64xf32>, vector<64x64xf32>, vector<8x64xf32> -> vector<8x64xf32>
    %117 = vector.broadcast %5 : vector<1x64xf32> to vector<8x64xf32>
    %118 = arith.addf %116, %117 : vector<8x64xf32>
    %c1_95 = arith.constant 1 : index
    %c0_96 = arith.constant 0 : index
    %c0_97 = arith.constant 0 : index
    %119 = vector.load %arg13[%c1_95, %c0_96, %c0_97] : memref<12x8x64xf32, #tpu.memory_space<vmem>>, vector<1x8x64xf32>
    %120 = vector.shape_cast %119 : vector<1x8x64xf32> to vector<8x64xf32>
    %121 = vector.shape_cast %118 : vector<8x64xf32> to vector<1x8x64xf32>
    tpu.vector_store %arg13[%c1_95, %c0_96, %c0_97], %121 {strides = array<i32>} : memref<12x8x64xf32, #tpu.memory_space<vmem>>, vector<1x8x64xf32>,
    %c2_98 = arith.constant 2 : index
    %c0_99 = arith.constant 0 : index
    %c0_100 = arith.constant 0 : index
    %122 = vector.load %arg13[%c2_98, %c0_99, %c0_100] : memref<12x8x64xf32, #tpu.memory_space<vmem>>, vector<1x8x64xf32>
    %123 = vector.shape_cast %122 : vector<1x8x64xf32> to vector<8x64xf32>
    %cst_101 = arith.constant dense<0.000000e+00> : vector<8x64xf32>
    %124 = tpu.matmul %115, %1, %cst_101 {dimension_numbers = #tpu.dot_dimension_numbers<[1], [0], [0], [1], [0, 0, 1, 1], [], []>} : vector<8x64xf32>, vector<64x64xf32>, vector<8x64xf32> -> vector<8x64xf32>
    %125 = arith.addf %123, %124 : vector<8x64xf32>
    %126 = math.tanh %125 : vector<8x64xf32>
    %cst_102 = arith.constant dense<0.000000e+00> : vector<8x64xf32>
    %127 = tpu.matmul %126, %3, %cst_102 {dimension_numbers = #tpu.dot_dimension_numbers<[1], [0], [0], [1], [0, 0, 1, 1], [], []>} : vector<8x64xf32>, vector<64x64xf32>, vector<8x64xf32> -> vector<8x64xf32>
    %128 = vector.broadcast %5 : vector<1x64xf32> to vector<8x64xf32>
    %129 = arith.addf %127, %128 : vector<8x64xf32>
    %c2_103 = arith.constant 2 : index
    %c0_104 = arith.constant 0 : index
    %c0_105 = arith.constant 0 : index
    %130 = vector.load %arg13[%c2_103, %c0_104, %c0_105] : memref<12x8x64xf32, #tpu.memory_space<vmem>>, vector<1x8x64xf32>
    %131 = vector.shape_cast %130 : vector<1x8x64xf32> to vector<8x64xf32>
    %132 = vector.shape_cast %129 : vector<8x64xf32> to vector<1x8x64xf32>
    tpu.vector_store %arg13[%c2_103, %c0_104, %c0_105], %132 {strides = array<i32>} : memref<12x8x64xf32, #tpu.memory_space<vmem>>, vector<1x8x64xf32>,
    %c3_106 = arith.constant 3 : index
    %c0_107 = arith.constant 0 : index
    %c0_108 = arith.constant 0 : index
    %133 = vector.load %arg13[%c3_106, %c0_107, %c0_108] : memref<12x8x64xf32, #tpu.memory_space<vmem>>, vector<1x8x64xf32>
    %134 = vector.shape_cast %133 : vector<1x8x64xf32> to vector<8x64xf32>
    %cst_109 = arith.constant dense<0.000000e+00> : vector<8x64xf32>
    %135 = tpu.matmul %126, %1, %cst_109 {dimension_numbers = #tpu.dot_dimension_numbers<[1], [0], [0], [1], [0, 0, 1, 1], [], []>} : vector<8x64xf32>, vector<64x64xf32>, vector<8x64xf32> -> vector<8x64xf32>
    %136 = arith.addf %134, %135 : vector<8x64xf32>
    %137 = math.tanh %136 : vector<8x64xf32>
    %cst_110 = arith.constant dense<0.000000e+00> : vector<8x64xf32>
    %138 = tpu.matmul %137, %3, %cst_110 {dimension_numbers = #tpu.dot_dimension_numbers<[1], [0], [0], [1], [0, 0, 1, 1], [], []>} : vector<8x64xf32>, vector<64x64xf32>, vector<8x64xf32> -> vector<8x64xf32>
    %139 = vector.broadcast %5 : vector<1x64xf32> to vector<8x64xf32>
    %140 = arith.addf %138, %139 : vector<8x64xf32>
    %c3_111 = arith.constant 3 : index
    %c0_112 = arith.constant 0 : index
    %c0_113 = arith.constant 0 : index
    %141 = vector.load %arg13[%c3_111, %c0_112, %c0_113] : memref<12x8x64xf32, #tpu.memory_space<vmem>>, vector<1x8x64xf32>
    %142 = vector.shape_cast %141 : vector<1x8x64xf32> to vector<8x64xf32>
    %143 = vector.shape_cast %140 : vector<8x64xf32> to vector<1x8x64xf32>
    tpu.vector_store %arg13[%c3_111, %c0_112, %c0_113], %143 {strides = array<i32>} : memref<12x8x64xf32, #tpu.memory_space<vmem>>, vector<1x8x64xf32>,
    %c4_114 = arith.constant 4 : index
    %c0_115 = arith.constant 0 : index
    %c0_116 = arith.constant 0 : index
    %144 = vector.load %arg13[%c4_114, %c0_115, %c0_116] : memref<12x8x64xf32, #tpu.memory_space<vmem>>, vector<1x8x64xf32>
    %145 = vector.shape_cast %144 : vector<1x8x64xf32> to vector<8x64xf32>
    %cst_117 = arith.constant dense<0.000000e+00> : vector<8x64xf32>
    %146 = tpu.matmul %137, %1, %cst_117 {dimension_numbers = #tpu.dot_dimension_numbers<[1], [0], [0], [1], [0, 0, 1, 1], [], []>} : vector<8x64xf32>, vector<64x64xf32>, vector<8x64xf32> -> vector<8x64xf32>
    %147 = arith.addf %145, %146 : vector<8x64xf32>
    %148 = math.tanh %147 : vector<8x64xf32>
    %cst_118 = arith.constant dense<0.000000e+00> : vector<8x64xf32>
    %149 = tpu.matmul %148, %3, %cst_118 {dimension_numbers = #tpu.dot_dimension_numbers<[1], [0], [0], [1], [0, 0, 1, 1], [], []>} : vector<8x64xf32>, vector<64x64xf32>, vector<8x64xf32> -> vector<8x64xf32>
    %150 = vector.broadcast %5 : vector<1x64xf32> to vector<8x64xf32>
    %151 = arith.addf %149, %150 : vector<8x64xf32>
    %c4_119 = arith.constant 4 : index
    %c0_120 = arith.constant 0 : index
    %c0_121 = arith.constant 0 : index
    %152 = vector.load %arg13[%c4_119, %c0_120, %c0_121] : memref<12x8x64xf32, #tpu.memory_space<vmem>>, vector<1x8x64xf32>
    %153 = vector.shape_cast %152 : vector<1x8x64xf32> to vector<8x64xf32>
    %154 = vector.shape_cast %151 : vector<8x64xf32> to vector<1x8x64xf32>
    tpu.vector_store %arg13[%c4_119, %c0_120, %c0_121], %154 {strides = array<i32>} : memref<12x8x64xf32, #tpu.memory_space<vmem>>, vector<1x8x64xf32>,
    %c5_122 = arith.constant 5 : index
    %c0_123 = arith.constant 0 : index
    %c0_124 = arith.constant 0 : index
    %155 = vector.load %arg13[%c5_122, %c0_123, %c0_124] : memref<12x8x64xf32, #tpu.memory_space<vmem>>, vector<1x8x64xf32>
    %156 = vector.shape_cast %155 : vector<1x8x64xf32> to vector<8x64xf32>
    %cst_125 = arith.constant dense<0.000000e+00> : vector<8x64xf32>
    %157 = tpu.matmul %148, %1, %cst_125 {dimension_numbers = #tpu.dot_dimension_numbers<[1], [0], [0], [1], [0, 0, 1, 1], [], []>} : vector<8x64xf32>, vector<64x64xf32>, vector<8x64xf32> -> vector<8x64xf32>
    %158 = arith.addf %156, %157 : vector<8x64xf32>
    %159 = math.tanh %158 : vector<8x64xf32>
    %cst_126 = arith.constant dense<0.000000e+00> : vector<8x64xf32>
    %160 = tpu.matmul %159, %3, %cst_126 {dimension_numbers = #tpu.dot_dimension_numbers<[1], [0], [0], [1], [0, 0, 1, 1], [], []>} : vector<8x64xf32>, vector<64x64xf32>, vector<8x64xf32> -> vector<8x64xf32>
    %161 = vector.broadcast %5 : vector<1x64xf32> to vector<8x64xf32>
    %162 = arith.addf %160, %161 : vector<8x64xf32>
    %c5_127 = arith.constant 5 : index
    %c0_128 = arith.constant 0 : index
    %c0_129 = arith.constant 0 : index
    %163 = vector.load %arg13[%c5_127, %c0_128, %c0_129] : memref<12x8x64xf32, #tpu.memory_space<vmem>>, vector<1x8x64xf32>
    %164 = vector.shape_cast %163 : vector<1x8x64xf32> to vector<8x64xf32>
    %165 = vector.shape_cast %162 : vector<8x64xf32> to vector<1x8x64xf32>
    tpu.vector_store %arg13[%c5_127, %c0_128, %c0_129], %165 {strides = array<i32>} : memref<12x8x64xf32, #tpu.memory_space<vmem>>, vector<1x8x64xf32>,
    %c6_130 = arith.constant 6 : index
    %c0_131 = arith.constant 0 : index
    %c0_132 = arith.constant 0 : index
    %166 = vector.load %arg13[%c6_130, %c0_131, %c0_132] : memref<12x8x64xf32, #tpu.memory_space<vmem>>, vector<1x8x64xf32>
    %167 = vector.shape_cast %166 : vector<1x8x64xf32> to vector<8x64xf32>
    %cst_133 = arith.constant dense<0.000000e+00> : vector<8x64xf32>
    %168 = tpu.matmul %159, %1, %cst_133 {dimension_numbers = #tpu.dot_dimension_numbers<[1], [0], [0], [1], [0, 0, 1, 1], [], []>} : vector<8x64xf32>, vector<64x64xf32>, vector<8x64xf32> -> vector<8x64xf32>
    %169 = arith.addf %167, %168 : vector<8x64xf32>
    %170 = math.tanh %169 : vector<8x64xf32>
    %cst_134 = arith.constant dense<0.000000e+00> : vector<8x64xf32>
    %171 = tpu.matmul %170, %3, %cst_134 {dimension_numbers = #tpu.dot_dimension_numbers<[1], [0], [0], [1], [0, 0, 1, 1], [], []>} : vector<8x64xf32>, vector<64x64xf32>, vector<8x64xf32> -> vector<8x64xf32>
    %172 = vector.broadcast %5 : vector<1x64xf32> to vector<8x64xf32>
    %173 = arith.addf %171, %172 : vector<8x64xf32>
    %c6_135 = arith.constant 6 : index
    %c0_136 = arith.constant 0 : index
    %c0_137 = arith.constant 0 : index
    %174 = vector.load %arg13[%c6_135, %c0_136, %c0_137] : memref<12x8x64xf32, #tpu.memory_space<vmem>>, vector<1x8x64xf32>
    %175 = vector.shape_cast %174 : vector<1x8x64xf32> to vector<8x64xf32>
    %176 = vector.shape_cast %173 : vector<8x64xf32> to vector<1x8x64xf32>
    tpu.vector_store %arg13[%c6_135, %c0_136, %c0_137], %176 {strides = array<i32>} : memref<12x8x64xf32, #tpu.memory_space<vmem>>, vector<1x8x64xf32>,
    %c7_138 = arith.constant 7 : index
    %c0_139 = arith.constant 0 : index
    %c0_140 = arith.constant 0 : index
    %177 = vector.load %arg13[%c7_138, %c0_139, %c0_140] : memref<12x8x64xf32, #tpu.memory_space<vmem>>, vector<1x8x64xf32>
    %178 = vector.shape_cast %177 : vector<1x8x64xf32> to vector<8x64xf32>
    %cst_141 = arith.constant dense<0.000000e+00> : vector<8x64xf32>
    %179 = tpu.matmul %170, %1, %cst_141 {dimension_numbers = #tpu.dot_dimension_numbers<[1], [0], [0], [1], [0, 0, 1, 1], [], []>} : vector<8x64xf32>, vector<64x64xf32>, vector<8x64xf32> -> vector<8x64xf32>
    %180 = arith.addf %178, %179 : vector<8x64xf32>
    %181 = math.tanh %180 : vector<8x64xf32>
    %cst_142 = arith.constant dense<0.000000e+00> : vector<8x64xf32>
    %182 = tpu.matmul %181, %3, %cst_142 {dimension_numbers = #tpu.dot_dimension_numbers<[1], [0], [0], [1], [0, 0, 1, 1], [], []>} : vector<8x64xf32>, vector<64x64xf32>, vector<8x64xf32> -> vector<8x64xf32>
    %183 = vector.broadcast %5 : vector<1x64xf32> to vector<8x64xf32>
    %184 = arith.addf %182, %183 : vector<8x64xf32>
    %c7_143 = arith.constant 7 : index
    %c0_144 = arith.constant 0 : index
    %c0_145 = arith.constant 0 : index
    %185 = vector.load %arg13[%c7_143, %c0_144, %c0_145] : memref<12x8x64xf32, #tpu.memory_space<vmem>>, vector<1x8x64xf32>
    %186 = vector.shape_cast %185 : vector<1x8x64xf32> to vector<8x64xf32>
    %187 = vector.shape_cast %184 : vector<8x64xf32> to vector<1x8x64xf32>
    tpu.vector_store %arg13[%c7_143, %c0_144, %c0_145], %187 {strides = array<i32>} : memref<12x8x64xf32, #tpu.memory_space<vmem>>, vector<1x8x64xf32>,
    %c8_146 = arith.constant 8 : index
    %c0_147 = arith.constant 0 : index
    %c0_148 = arith.constant 0 : index
    %188 = vector.load %arg13[%c8_146, %c0_147, %c0_148] : memref<12x8x64xf32, #tpu.memory_space<vmem>>, vector<1x8x64xf32>
    %189 = vector.shape_cast %188 : vector<1x8x64xf32> to vector<8x64xf32>
    %cst_149 = arith.constant dense<0.000000e+00> : vector<8x64xf32>
    %190 = tpu.matmul %181, %1, %cst_149 {dimension_numbers = #tpu.dot_dimension_numbers<[1], [0], [0], [1], [0, 0, 1, 1], [], []>} : vector<8x64xf32>, vector<64x64xf32>, vector<8x64xf32> -> vector<8x64xf32>
    %191 = arith.addf %189, %190 : vector<8x64xf32>
    %192 = math.tanh %191 : vector<8x64xf32>
    %cst_150 = arith.constant dense<0.000000e+00> : vector<8x64xf32>
    %193 = tpu.matmul %192, %3, %cst_150 {dimension_numbers = #tpu.dot_dimension_numbers<[1], [0], [0], [1], [0, 0, 1, 1], [], []>} : vector<8x64xf32>, vector<64x64xf32>, vector<8x64xf32> -> vector<8x64xf32>
    %194 = vector.broadcast %5 : vector<1x64xf32> to vector<8x64xf32>
    %195 = arith.addf %193, %194 : vector<8x64xf32>
    %c8_151 = arith.constant 8 : index
    %c0_152 = arith.constant 0 : index
    %c0_153 = arith.constant 0 : index
    %196 = vector.load %arg13[%c8_151, %c0_152, %c0_153] : memref<12x8x64xf32, #tpu.memory_space<vmem>>, vector<1x8x64xf32>
    %197 = vector.shape_cast %196 : vector<1x8x64xf32> to vector<8x64xf32>
    %198 = vector.shape_cast %195 : vector<8x64xf32> to vector<1x8x64xf32>
    tpu.vector_store %arg13[%c8_151, %c0_152, %c0_153], %198 {strides = array<i32>} : memref<12x8x64xf32, #tpu.memory_space<vmem>>, vector<1x8x64xf32>,
    %c9_154 = arith.constant 9 : index
    %c0_155 = arith.constant 0 : index
    %c0_156 = arith.constant 0 : index
    %199 = vector.load %arg13[%c9_154, %c0_155, %c0_156] : memref<12x8x64xf32, #tpu.memory_space<vmem>>, vector<1x8x64xf32>
    %200 = vector.shape_cast %199 : vector<1x8x64xf32> to vector<8x64xf32>
    %cst_157 = arith.constant dense<0.000000e+00> : vector<8x64xf32>
    %201 = tpu.matmul %192, %1, %cst_157 {dimension_numbers = #tpu.dot_dimension_numbers<[1], [0], [0], [1], [0, 0, 1, 1], [], []>} : vector<8x64xf32>, vector<64x64xf32>, vector<8x64xf32> -> vector<8x64xf32>
    %202 = arith.addf %200, %201 : vector<8x64xf32>
    %203 = math.tanh %202 : vector<8x64xf32>
    %cst_158 = arith.constant dense<0.000000e+00> : vector<8x64xf32>
    %204 = tpu.matmul %203, %3, %cst_158 {dimension_numbers = #tpu.dot_dimension_numbers<[1], [0], [0], [1], [0, 0, 1, 1], [], []>} : vector<8x64xf32>, vector<64x64xf32>, vector<8x64xf32> -> vector<8x64xf32>
    %205 = vector.broadcast %5 : vector<1x64xf32> to vector<8x64xf32>
    %206 = arith.addf %204, %205 : vector<8x64xf32>
    %c9_159 = arith.constant 9 : index
    %c0_160 = arith.constant 0 : index
    %c0_161 = arith.constant 0 : index
    %207 = vector.load %arg13[%c9_159, %c0_160, %c0_161] : memref<12x8x64xf32, #tpu.memory_space<vmem>>, vector<1x8x64xf32>
    %208 = vector.shape_cast %207 : vector<1x8x64xf32> to vector<8x64xf32>
    %209 = vector.shape_cast %206 : vector<8x64xf32> to vector<1x8x64xf32>
    tpu.vector_store %arg13[%c9_159, %c0_160, %c0_161], %209 {strides = array<i32>} : memref<12x8x64xf32, #tpu.memory_space<vmem>>, vector<1x8x64xf32>,
    %c10_162 = arith.constant 10 : index
    %c0_163 = arith.constant 0 : index
    %c0_164 = arith.constant 0 : index
    %210 = vector.load %arg13[%c10_162, %c0_163, %c0_164] : memref<12x8x64xf32, #tpu.memory_space<vmem>>, vector<1x8x64xf32>
    %211 = vector.shape_cast %210 : vector<1x8x64xf32> to vector<8x64xf32>
    %cst_165 = arith.constant dense<0.000000e+00> : vector<8x64xf32>
    %212 = tpu.matmul %203, %1, %cst_165 {dimension_numbers = #tpu.dot_dimension_numbers<[1], [0], [0], [1], [0, 0, 1, 1], [], []>} : vector<8x64xf32>, vector<64x64xf32>, vector<8x64xf32> -> vector<8x64xf32>
    %213 = arith.addf %211, %212 : vector<8x64xf32>
    %214 = math.tanh %213 : vector<8x64xf32>
    %cst_166 = arith.constant dense<0.000000e+00> : vector<8x64xf32>
    %215 = tpu.matmul %214, %3, %cst_166 {dimension_numbers = #tpu.dot_dimension_numbers<[1], [0], [0], [1], [0, 0, 1, 1], [], []>} : vector<8x64xf32>, vector<64x64xf32>, vector<8x64xf32> -> vector<8x64xf32>
    %216 = vector.broadcast %5 : vector<1x64xf32> to vector<8x64xf32>
    %217 = arith.addf %215, %216 : vector<8x64xf32>
    %c10_167 = arith.constant 10 : index
    %c0_168 = arith.constant 0 : index
    %c0_169 = arith.constant 0 : index
    %218 = vector.load %arg13[%c10_167, %c0_168, %c0_169] : memref<12x8x64xf32, #tpu.memory_space<vmem>>, vector<1x8x64xf32>
    %219 = vector.shape_cast %218 : vector<1x8x64xf32> to vector<8x64xf32>
    %220 = vector.shape_cast %217 : vector<8x64xf32> to vector<1x8x64xf32>
    tpu.vector_store %arg13[%c10_167, %c0_168, %c0_169], %220 {strides = array<i32>} : memref<12x8x64xf32, #tpu.memory_space<vmem>>, vector<1x8x64xf32>,
    %c11_170 = arith.constant 11 : index
    %c0_171 = arith.constant 0 : index
    %c0_172 = arith.constant 0 : index
    %221 = vector.load %arg13[%c11_170, %c0_171, %c0_172] : memref<12x8x64xf32, #tpu.memory_space<vmem>>, vector<1x8x64xf32>
    %222 = vector.shape_cast %221 : vector<1x8x64xf32> to vector<8x64xf32>
    %cst_173 = arith.constant dense<0.000000e+00> : vector<8x64xf32>
    %223 = tpu.matmul %214, %1, %cst_173 {dimension_numbers = #tpu.dot_dimension_numbers<[1], [0], [0], [1], [0, 0, 1, 1], [], []>} : vector<8x64xf32>, vector<64x64xf32>, vector<8x64xf32> -> vector<8x64xf32>
    %224 = arith.addf %222, %223 : vector<8x64xf32>
    %225 = math.tanh %224 : vector<8x64xf32>
    %cst_174 = arith.constant dense<0.000000e+00> : vector<8x64xf32>
    %226 = tpu.matmul %225, %3, %cst_174 {dimension_numbers = #tpu.dot_dimension_numbers<[1], [0], [0], [1], [0, 0, 1, 1], [], []>} : vector<8x64xf32>, vector<64x64xf32>, vector<8x64xf32> -> vector<8x64xf32>
    %227 = vector.broadcast %5 : vector<1x64xf32> to vector<8x64xf32>
    %228 = arith.addf %226, %227 : vector<8x64xf32>
    %c11_175 = arith.constant 11 : index
    %c0_176 = arith.constant 0 : index
    %c0_177 = arith.constant 0 : index
    %229 = vector.load %arg13[%c11_175, %c0_176, %c0_177] : memref<12x8x64xf32, #tpu.memory_space<vmem>>, vector<1x8x64xf32>
    %230 = vector.shape_cast %229 : vector<1x8x64xf32> to vector<8x64xf32>
    %231 = vector.shape_cast %228 : vector<8x64xf32> to vector<1x8x64xf32>
    tpu.vector_store %arg13[%c11_175, %c0_176, %c0_177], %231 {strides = array<i32>} : memref<12x8x64xf32, #tpu.memory_space<vmem>>, vector<1x8x64xf32>,
    %c0_178 = arith.constant 0 : index
    %c0_179 = arith.constant 0 : index
    %c0_180 = arith.constant 0 : index
    %232 = vector.load %arg13[%c0_178, %c0_179, %c0_180] : memref<12x8x64xf32, #tpu.memory_space<vmem>>, vector<1x8x64xf32>
    %233 = vector.shape_cast %232 : vector<1x8x64xf32> to vector<8x64xf32>
    %234 = math.tanh %233 : vector<8x64xf32>
    %c1_181 = arith.constant 1 : index
    %c0_182 = arith.constant 0 : index
    %c0_183 = arith.constant 0 : index
    %235 = vector.load %arg13[%c1_181, %c0_182, %c0_183] : memref<12x8x64xf32, #tpu.memory_space<vmem>>, vector<1x8x64xf32>
    %236 = vector.shape_cast %235 : vector<1x8x64xf32> to vector<8x64xf32>
    %cst_184 = arith.constant dense<0.000000e+00> : vector<8x64xf32>
    %237 = tpu.matmul %234, %4, %cst_184 {dimension_numbers = #tpu.dot_dimension_numbers<[1], [0], [0], [1], [0, 0, 1, 1], [], []>} : vector<8x64xf32>, vector<64x64xf32>, vector<8x64xf32> -> vector<8x64xf32>
    %238 = arith.addf %236, %237 : vector<8x64xf32>
    %239 = math.tanh %238 : vector<8x64xf32>
    %c2_185 = arith.constant 2 : index
    %c0_186 = arith.constant 0 : index
    %c0_187 = arith.constant 0 : index
    %240 = vector.load %arg13[%c2_185, %c0_186, %c0_187] : memref<12x8x64xf32, #tpu.memory_space<vmem>>, vector<1x8x64xf32>
    %241 = vector.shape_cast %240 : vector<1x8x64xf32> to vector<8x64xf32>
    %cst_188 = arith.constant dense<0.000000e+00> : vector<8x64xf32>
    %242 = tpu.matmul %239, %4, %cst_188 {dimension_numbers = #tpu.dot_dimension_numbers<[1], [0], [0], [1], [0, 0, 1, 1], [], []>} : vector<8x64xf32>, vector<64x64xf32>, vector<8x64xf32> -> vector<8x64xf32>
    %243 = arith.addf %241, %242 : vector<8x64xf32>
    %244 = math.tanh %243 : vector<8x64xf32>
    %c3_189 = arith.constant 3 : index
    %c0_190 = arith.constant 0 : index
    %c0_191 = arith.constant 0 : index
    %245 = vector.load %arg13[%c3_189, %c0_190, %c0_191] : memref<12x8x64xf32, #tpu.memory_space<vmem>>, vector<1x8x64xf32>
    %246 = vector.shape_cast %245 : vector<1x8x64xf32> to vector<8x64xf32>
    %cst_192 = arith.constant dense<0.000000e+00> : vector<8x64xf32>
    %247 = tpu.matmul %244, %4, %cst_192 {dimension_numbers = #tpu.dot_dimension_numbers<[1], [0], [0], [1], [0, 0, 1, 1], [], []>} : vector<8x64xf32>, vector<64x64xf32>, vector<8x64xf32> -> vector<8x64xf32>
    %248 = arith.addf %246, %247 : vector<8x64xf32>
    %249 = math.tanh %248 : vector<8x64xf32>
    %c4_193 = arith.constant 4 : index
    %c0_194 = arith.constant 0 : index
    %c0_195 = arith.constant 0 : index
    %250 = vector.load %arg13[%c4_193, %c0_194, %c0_195] : memref<12x8x64xf32, #tpu.memory_space<vmem>>, vector<1x8x64xf32>
    %251 = vector.shape_cast %250 : vector<1x8x64xf32> to vector<8x64xf32>
    %cst_196 = arith.constant dense<0.000000e+00> : vector<8x64xf32>
    %252 = tpu.matmul %249, %4, %cst_196 {dimension_numbers = #tpu.dot_dimension_numbers<[1], [0], [0], [1], [0, 0, 1, 1], [], []>} : vector<8x64xf32>, vector<64x64xf32>, vector<8x64xf32> -> vector<8x64xf32>
    %253 = arith.addf %251, %252 : vector<8x64xf32>
    %254 = math.tanh %253 : vector<8x64xf32>
    %c5_197 = arith.constant 5 : index
    %c0_198 = arith.constant 0 : index
    %c0_199 = arith.constant 0 : index
    %255 = vector.load %arg13[%c5_197, %c0_198, %c0_199] : memref<12x8x64xf32, #tpu.memory_space<vmem>>, vector<1x8x64xf32>
    %256 = vector.shape_cast %255 : vector<1x8x64xf32> to vector<8x64xf32>
    %cst_200 = arith.constant dense<0.000000e+00> : vector<8x64xf32>
    %257 = tpu.matmul %254, %4, %cst_200 {dimension_numbers = #tpu.dot_dimension_numbers<[1], [0], [0], [1], [0, 0, 1, 1], [], []>} : vector<8x64xf32>, vector<64x64xf32>, vector<8x64xf32> -> vector<8x64xf32>
    %258 = arith.addf %256, %257 : vector<8x64xf32>
    %259 = math.tanh %258 : vector<8x64xf32>
    %c6_201 = arith.constant 6 : index
    %c0_202 = arith.constant 0 : index
    %c0_203 = arith.constant 0 : index
    %260 = vector.load %arg13[%c6_201, %c0_202, %c0_203] : memref<12x8x64xf32, #tpu.memory_space<vmem>>, vector<1x8x64xf32>
    %261 = vector.shape_cast %260 : vector<1x8x64xf32> to vector<8x64xf32>
    %cst_204 = arith.constant dense<0.000000e+00> : vector<8x64xf32>
    %262 = tpu.matmul %259, %4, %cst_204 {dimension_numbers = #tpu.dot_dimension_numbers<[1], [0], [0], [1], [0, 0, 1, 1], [], []>} : vector<8x64xf32>, vector<64x64xf32>, vector<8x64xf32> -> vector<8x64xf32>
    %263 = arith.addf %261, %262 : vector<8x64xf32>
    %264 = math.tanh %263 : vector<8x64xf32>
    %c7_205 = arith.constant 7 : index
    %c0_206 = arith.constant 0 : index
    %c0_207 = arith.constant 0 : index
    %265 = vector.load %arg13[%c7_205, %c0_206, %c0_207] : memref<12x8x64xf32, #tpu.memory_space<vmem>>, vector<1x8x64xf32>
    %266 = vector.shape_cast %265 : vector<1x8x64xf32> to vector<8x64xf32>
    %cst_208 = arith.constant dense<0.000000e+00> : vector<8x64xf32>
    %267 = tpu.matmul %264, %4, %cst_208 {dimension_numbers = #tpu.dot_dimension_numbers<[1], [0], [0], [1], [0, 0, 1, 1], [], []>} : vector<8x64xf32>, vector<64x64xf32>, vector<8x64xf32> -> vector<8x64xf32>
    %268 = arith.addf %266, %267 : vector<8x64xf32>
    %269 = math.tanh %268 : vector<8x64xf32>
    %c8_209 = arith.constant 8 : index
    %c0_210 = arith.constant 0 : index
    %c0_211 = arith.constant 0 : index
    %270 = vector.load %arg13[%c8_209, %c0_210, %c0_211] : memref<12x8x64xf32, #tpu.memory_space<vmem>>, vector<1x8x64xf32>
    %271 = vector.shape_cast %270 : vector<1x8x64xf32> to vector<8x64xf32>
    %cst_212 = arith.constant dense<0.000000e+00> : vector<8x64xf32>
    %272 = tpu.matmul %269, %4, %cst_212 {dimension_numbers = #tpu.dot_dimension_numbers<[1], [0], [0], [1], [0, 0, 1, 1], [], []>} : vector<8x64xf32>, vector<64x64xf32>, vector<8x64xf32> -> vector<8x64xf32>
    %273 = arith.addf %271, %272 : vector<8x64xf32>
    %274 = math.tanh %273 : vector<8x64xf32>
    %c9_213 = arith.constant 9 : index
    %c0_214 = arith.constant 0 : index
    %c0_215 = arith.constant 0 : index
    %275 = vector.load %arg13[%c9_213, %c0_214, %c0_215] : memref<12x8x64xf32, #tpu.memory_space<vmem>>, vector<1x8x64xf32>
    %276 = vector.shape_cast %275 : vector<1x8x64xf32> to vector<8x64xf32>
    %cst_216 = arith.constant dense<0.000000e+00> : vector<8x64xf32>
    %277 = tpu.matmul %274, %4, %cst_216 {dimension_numbers = #tpu.dot_dimension_numbers<[1], [0], [0], [1], [0, 0, 1, 1], [], []>} : vector<8x64xf32>, vector<64x64xf32>, vector<8x64xf32> -> vector<8x64xf32>
    %278 = arith.addf %276, %277 : vector<8x64xf32>
    %279 = math.tanh %278 : vector<8x64xf32>
    %c10_217 = arith.constant 10 : index
    %c0_218 = arith.constant 0 : index
    %c0_219 = arith.constant 0 : index
    %280 = vector.load %arg13[%c10_217, %c0_218, %c0_219] : memref<12x8x64xf32, #tpu.memory_space<vmem>>, vector<1x8x64xf32>
    %281 = vector.shape_cast %280 : vector<1x8x64xf32> to vector<8x64xf32>
    %cst_220 = arith.constant dense<0.000000e+00> : vector<8x64xf32>
    %282 = tpu.matmul %279, %4, %cst_220 {dimension_numbers = #tpu.dot_dimension_numbers<[1], [0], [0], [1], [0, 0, 1, 1], [], []>} : vector<8x64xf32>, vector<64x64xf32>, vector<8x64xf32> -> vector<8x64xf32>
    %283 = arith.addf %281, %282 : vector<8x64xf32>
    %284 = math.tanh %283 : vector<8x64xf32>
    %c11_221 = arith.constant 11 : index
    %c0_222 = arith.constant 0 : index
    %c0_223 = arith.constant 0 : index
    %285 = vector.load %arg13[%c11_221, %c0_222, %c0_223] : memref<12x8x64xf32, #tpu.memory_space<vmem>>, vector<1x8x64xf32>
    %286 = vector.shape_cast %285 : vector<1x8x64xf32> to vector<8x64xf32>
    %cst_224 = arith.constant dense<0.000000e+00> : vector<8x64xf32>
    %287 = tpu.matmul %284, %4, %cst_224 {dimension_numbers = #tpu.dot_dimension_numbers<[1], [0], [0], [1], [0, 0, 1, 1], [], []>} : vector<8x64xf32>, vector<64x64xf32>, vector<8x64xf32> -> vector<8x64xf32>
    %288 = arith.addf %286, %287 : vector<8x64xf32>
    %289 = math.tanh %288 : vector<8x64xf32>
    %c0_225 = arith.constant 0 : index
    %c0_226 = arith.constant 0 : index
    %290 = vector.load %arg8[%c0_225, %c0_226] : memref<64x128xf32, #tpu.memory_space<vmem>>, vector<64x128xf32>
    %cst_227 = arith.constant dense<0.000000e+00> : vector<8x128xf32>
    %291 = tpu.matmul %289, %290, %cst_227 {dimension_numbers = #tpu.dot_dimension_numbers<[1], [0], [0], [1], [0, 0, 1, 1], [], []>} : vector<8x64xf32>, vector<64x128xf32>, vector<8x128xf32> -> vector<8x128xf32>
    %c0_228 = arith.constant 0 : index
    %c0_229 = arith.constant 0 : index
    %292 = vector.load %arg9[%c0_228, %c0_229] : memref<1x128xf32, #tpu.memory_space<vmem>>, vector<1x128xf32>
    %293 = vector.broadcast %292 : vector<1x128xf32> to vector<8x128xf32>
    %294 = arith.addf %291, %293 : vector<8x128xf32>
    %cst_230 = arith.constant 0.000000e+00 : f32
    %295 = vector.broadcast %cst_230 : f32 to vector<8x128xf32>
    %296 = arith.maximumf %294, %295 : vector<8x128xf32>
    %c0_231 = arith.constant 0 : index
    %c0_232 = arith.constant 0 : index
    %297 = vector.load %arg10[%c0_231, %c0_232] : memref<128x1xf32, #tpu.memory_space<vmem>>, vector<128x1xf32>
    %cst_233 = arith.constant dense<0.000000e+00> : vector<8x1xf32>
    %298 = tpu.matmul %296, %297, %cst_233 {dimension_numbers = #tpu.dot_dimension_numbers<[1], [0], [0], [1], [0, 0, 1, 1], [], []>} : vector<8x128xf32>, vector<128x1xf32>, vector<8x1xf32> -> vector<8x1xf32>
    %c0_234 = arith.constant 0 : index
    %c0_235 = arith.constant 0 : index
    %299 = vector.load %arg11[%c0_234, %c0_235] : memref<1x1xf32, #tpu.memory_space<vmem>>, vector<1x1xf32>
    %300 = vector.broadcast %299 : vector<1x1xf32> to vector<8x1xf32>
    %301 = arith.addf %298, %300 : vector<8x1xf32>
    %c0_236 = arith.constant 0 : index
    %c0_237 = arith.constant 0 : index
    %302 = vector.load %arg12[%c0_236, %c0_237] : memref<8x1xf32, #tpu.memory_space<vmem>>, vector<8x1xf32>
    tpu.vector_store %arg12[%c0_236, %c0_237], %301 {strides = array<i32>} : memref<8x1xf32, #tpu.memory_space<vmem>>, vector<8x1xf32>,
    return
  }
  func.func @transform_0(%arg0: i32) -> (i32, i32, i32) {
    %c0_i32 = arith.constant 0 : i32
    %c0_i32_0 = arith.constant 0 : i32
    %c0_i32_1 = arith.constant 0 : i32
    return %c0_i32, %arg0, %c0_i32_0 : i32, i32, i32
  }
  func.func @transform_1(%arg0: i32) -> (i32, i32) {
    %c0_i32 = arith.constant 0 : i32
    %c0_i32_0 = arith.constant 0 : i32
    %c0_i32_1 = arith.constant 0 : i32
    return %c0_i32, %c0_i32_0 : i32, i32
  }
  func.func @transform_2(%arg0: i32) -> (i32, i32) {
    %c0_i32 = arith.constant 0 : i32
    %c0_i32_0 = arith.constant 0 : i32
    %c0_i32_1 = arith.constant 0 : i32
    return %c0_i32, %c0_i32_0 : i32, i32
  }
  func.func @transform_3(%arg0: i32) -> (i32, i32) {
    %c0_i32 = arith.constant 0 : i32
    %c0_i32_0 = arith.constant 0 : i32
    %c0_i32_1 = arith.constant 0 : i32
    return %c0_i32, %c0_i32_0 : i32, i32
  }
  func.func @transform_4(%arg0: i32) -> (i32, i32) {
    %c0_i32 = arith.constant 0 : i32
    %c0_i32_0 = arith.constant 0 : i32
    %c0_i32_1 = arith.constant 0 : i32
    return %c0_i32, %c0_i32_0 : i32, i32
  }
  func.func @transform_5(%arg0: i32) -> (i32, i32) {
    %c0_i32 = arith.constant 0 : i32
    %c0_i32_0 = arith.constant 0 : i32
    %c0_i32_1 = arith.constant 0 : i32
    return %c0_i32, %c0_i32_0 : i32, i32
  }
  func.func @transform_6(%arg0: i32) -> (i32, i32) {
    %c0_i32 = arith.constant 0 : i32
    %c0_i32_0 = arith.constant 0 : i32
    %c0_i32_1 = arith.constant 0 : i32
    return %c0_i32, %c0_i32_0 : i32, i32
  }
  func.func @transform_7(%arg0: i32) -> (i32, i32) {
    %c0_i32 = arith.constant 0 : i32
    %c0_i32_0 = arith.constant 0 : i32
    %c0_i32_1 = arith.constant 0 : i32
    return %c0_i32, %c0_i32_0 : i32, i32
  }
  func.func @transform_8(%arg0: i32) -> (i32, i32) {
    %c0_i32 = arith.constant 0 : i32
    %c0_i32_0 = arith.constant 0 : i32
    %c0_i32_1 = arith.constant 0 : i32
    return %c0_i32, %c0_i32_0 : i32, i32
  }
  func.func @transform_9(%arg0: i32) -> (i32, i32) {
    %c0_i32 = arith.constant 0 : i32
    %c0_i32_0 = arith.constant 0 : i32
    %c0_i32_1 = arith.constant 0 : i32
    return %c0_i32, %c0_i32_0 : i32, i32
  }
  func.func @transform_10(%arg0: i32) -> (i32, i32) {
    %c0_i32 = arith.constant 0 : i32
    %c0_i32_0 = arith.constant 0 : i32
    %c0_i32_1 = arith.constant 0 : i32
    return %c0_i32, %c0_i32_0 : i32, i32
  }
  func.func @transform_11(%arg0: i32) -> (i32, i32) {
    %c0_i32 = arith.constant 0 : i32
    %c0_i32_0 = arith.constant 0 : i32
    return %arg0, %c0_i32 : i32, i32
  }
}

</mosaic_0001>

<bundles_post_ra>
// kernel: tpu_custom_call.1
= control target key start
LH: loop header
LB: loop body
LE: loop exit
PB: predicated region body
PF: predicated region fallthrough
CT: control target
= control target key end

     0   :  { %s7081_s0 = inlined_call_operand.hbm [shape: f32[12,16,17], index: 0, kind: input, shape index: {}]   ;;  %s7082_s1 = inlined_call_operand.hbm [shape: f32[17,64], index: 1, kind: input, shape index: {}]   ;;  %s7083_s2 = inlined_call_operand.vmem [shape: f32[64,64], index: 2, kind: input, shape index: {}]   ;;  %s7084_s3 = inlined_call_operand.vmem [shape: f32[1,64], index: 3, kind: input, shape index: {}]   ;;  %s7085_s4 = inlined_call_operand.vmem [shape: f32[64,64], index: 4, kind: input, shape index: {}]   ;;  %s7086_s5 = inlined_call_operand.hbm [shape: f32[64,64], index: 5, kind: input, shape index: {}]   ;;  %s7087_s6 = inlined_call_operand.vmem [shape: f32[1,64], index: 6, kind: input, shape index: {}]   ;;  %s7088_s7 = inlined_call_operand.hbm [shape: f32[64,128], index: 7, kind: input, shape index: {}]   ;;  %s7089_s8 = inlined_call_operand.vmem [shape: f32[1,128], index: 8, kind: input, shape index: {}]   ;;  %s7090_s9 = inlined_call_operand.vmem [shape: f32[128,1], index: 9, kind: input, shape index: {}]   ;;  %s7091_s10 = inlined_call_operand.<no memory space> [shape: f32[1,1], index: 10, kind: input, shape index: {}]   ;;  %s7092_s11 = inlined_call_operand.vmem [shape: f32[16,1], index: 11, kind: output, shape index: {}]  }
   0x1   :  { %7096 = sst [smem:[#allocation15_spill]] %s7082_s1  ;;  %v16_v0 = vstv %s7091_s10 }
   0x2   :  { %7097 = sst [smem:[#allocation16_spill]] %s7086_s5  ;;  %17 = vst [vmem:[#allocation3] sm:$0x1] %v16_v0 }
   0x3   :  { %18 = vsyncpa [#allocation5], 0 }
   0x4   :  { %20 = vsyncpa [#allocation5 + $0x1], 0 }
   0x5   :  { %21 = vsyncpa [#allocation7], 0 }
   0x6   :  { %22 = vsyncpa [#allocation10], 0  ;;  %s5867_s19 = smov 0   ;;  %s5869_s20 = smov 0  }
   0x7   :  { %s5871_s21 = smov 0   ;;  %s5873_s22 = smov 0  }
   0x8 LB: > { %s5886_s10 = sadd.s32 4294967295, %s5793_s22   ;;  %s5889_s23 = sadd.s32 1, %s5793_s22   ;;  %s5793_s22 = sphi %s5873_s22, %s7115_s22   ;;  %s5789_s21 = sphi %s5871_s21, %s7114_s21   ;;  %s5785_s20 = sphi %s5869_s20, %s7113_s20   ;;  %s5781_s19 = sphi %s5867_s19, %s7112_s19  }
   0x9   : > { %s32_s24 = ssub.s32 %s5793_s22, %s5889_s23  ;;  %s35_s25 = sadd.s32 1, %s5789_s21 }
   0xa   : > { %p33_p0 = scmp.eq.s32.totalorder %s32_s24, 0  ;;  %p42_p1 = scmp.ne.s32.totalorder %s5789_s21, %s5785_s20 }
   0xb   : > { %p43_p2 = scmp.eq.s32.totalorder %s5793_s22, 0  ;;  %p48_p3 = scmp.ne.s32.totalorder %s5785_s20, %s5781_s19 }
   0xc   : > { %s5899_s26 = scalar_select %p33_p0, %s5789_s21, %s35_s25  }
   0xd   : > { %p44_p4 = por %p43_p2, %p42_p1  ;;  %p7093_p5 = scmp.eq.s32.totalorder %s5886_s10, 0 }
   0xe   : > { %7098 = sst [smem:[#allocation14_spill]] %s5899_s26  ;;  %p4229_p6 = scmp.ge.s32.totalorder %s5793_s22, 1 }
   0xf   : > { %p295_p7 = scmp.lt.s32.totalorder %s5793_s22, 3  ;;  %p5906_p8 = por %p7093_p5, %p48_p3 }
  0x10   : > { %s5795_s29 = smov [#allocation6]   ;;  %p5537_p12 = scmp.lt.s32.totalorder %s5793_s22, 2 }
  0x11   : > { %s7099_s27 = scalar_select %p5906_p8, 1, 0 }
  0x12   : > { %p5910_p9 = pnand %p4229_p6, %p295_p7  ;;  %s307_s30 = sshll.u32 %s5795_s29, 4  ;;  %s308_s30 = int_to_ptr.vmem [resolvable:$true] %s307_s30 }
  0x13   : > { %p5923_p13 = pnand %p5537_p12, %p44_p4  ;;  %s5656_s14 = scalar_lea.vmem %s308_s30, 384 }
  0x14   : > { %s7100_s28 = scalar_select %p5910_p9, 1, 0 }
  0x15   : > { %p5520_p10 = pneg %p5910_p9  ;;  %p5657_p1 = scmp.ne.s32.totalorder %s308_s30, %s5656_s14 }
  0x16   : > { %p5664_p6 = scmp.lt.s32.totalorder %s308_s30, %s308_s30  ;;  %p5665_p7 = scmp.lt.s32.totalorder %s5656_s14, %s5656_s14 }
  0x17   : > { %p5918_p11 = pnand %p5520_p10, %p7093_p5 }
  0x18   : > { %p5666_p10 = por %p5665_p7, %p5664_p6 }
  0x19   : > { %p5647_p0 = pneg %p5918_p11 }
  0x1b   : > { %p5659_p2 = pnand %p5657_p1, %p5647_p0 }
  0x1d   : > { %p5660_p3 = pneg %p5659_p2 }
  0x1f   : > { %p5667_p5 = pnand %p5666_p10, %p5660_p3 }
  0x21   : > { %5670 = shalt.err (!%p5667_p5)
}
  0x22   : > { %s5796_s15 = smov 128   ;;  %s5797_s16 = smov 8  }
  0x23   : > { %s7103_s1 = sld [smem:[#allocation15_spill]]  ;;  %s5798_s19 = smov [#allocation8]  }
  0x24   : > { %s329_s24 = sshll.u32 %s5798_s19, 4  ;;  %s5799_s25 = smov [#allocation9]   ;;  %s330_s24 = int_to_ptr.vmem [resolvable:$true] %s329_s24 }
  0x25   : > { %s345_s29 = sshll.u32 %s5799_s25, 4  ;;  %s5682_s14 = scalar_lea.vmem %s330_s24, 1024  ;;  %s346_s29 = int_to_ptr.vmem [resolvable:$true] %s345_s29 }
  0x26   : > { %p5683_p4 = scmp.ne.s32.totalorder %s330_s24, %s5682_s14  ;;  %p5690_p1 = scmp.lt.s32.totalorder %s330_s24, %s330_s24 }
  0x27   : > { %p5691_p2 = scmp.lt.s32.totalorder %s5682_s14, %s5682_s14 }
  0x28   : > { %p5685_p5 = pnand %p5683_p4, %p5647_p0 }
  0x29   : > { %5523 = dma.hbm_to_vmem [thread:$0]  (!%p5918_p11), %s7103_s1, 384, %s308_s30, [#allocation7], %s5796_s15, %s5796_s15, %s5797_s16  }
  0x2a   : > { %p5686_p12 = pneg %p5685_p5  ;;  %p5692_p3 = por %p5691_p2, %p5690_p1 }
  0x2c   : > { %p5693_p6 = pnand %p5692_p3, %p5686_p12 }
  0x2e   : > { %5696 = shalt.err (!%p5693_p6)
}
  0x2f   : > { %s7104_s5 = sld [smem:[#allocation16_spill]]  ;;  %s368_s18 = sand.u32 1, %s5789_s21  }
  0x30   : > { %s5708_s19 = scalar_lea.vmem %s346_s29, 1024  ;;  %p5716_p5 = scmp.lt.s32.totalorder %s346_s29, %s346_s29 }
  0x31   : > { %p5709_p7 = scmp.ne.s32.totalorder %s346_s29, %s5708_s19  ;;  %p5717_p12 = scmp.lt.s32.totalorder %s5708_s19, %s5708_s19 }
  0x33   : > { %p5711_p10 = pnand %p5709_p7, %p5647_p0  ;;  %p5718_p1 = por %p5717_p12, %p5716_p5 }
  0x35   : > { %5526 = dma.hbm_to_vmem [thread:$0]  (!%p5918_p11), %s7104_s5, 1024, %s330_s24, [#allocation7], %s5796_s15, %s5796_s15, %s5797_s16  }
  0x36   : > { %p5712_p4 = pneg %p5711_p10 }
  0x38   : > { %p5719_p2 = pnand %p5718_p1, %p5712_p4 }
  0x3a   : > { %5722 = shalt.err (!%p5719_p2)
}
  0x3b   : > { %5529 = dma.hbm_to_vmem [thread:$0]  (!%p5918_p11), %s7088_s7, 1024, %s346_s29, [#allocation10], %s5796_s15, %s5796_s15, %s5797_s16  }
  0x3c   : > { %s5504_s14 = smul.u32 96, %s368_s18  ;;  %s4234_s30 = sshll.u32 %s5793_s22, 7 }
  0x3d   : > { %s5967_s19 = scalar_lea.hbm %s7081_s0, %s4234_s30  ;;  %s5971_s26 = scalar_lea.sflag [#allocation5], %s368_s18 }
  0x3e   : > { %s372_s12 = scalar_lea.vmem [#allocation4], %s5504_s14  ;;  %s5723_s25 = scalar_lea.hbm %s5967_s19, 1536 }
  0x3f   : > { %s378_s5 = sshll.u32 %s372_s12, 4  ;;  %p5724_p0 = scmp.ne.s32.totalorder %s5967_s19, %s5723_s25  ;;  %s5969_s5 = int_to_ptr.vmem [resolvable:$true] %s378_s5 }
  0x40   : > { %p5725_p11 = pneg %p5923_p13  ;;  %s5728_s1 = scalar_lea.hbm %s7081_s0, 3072 }
  0x41   : > { %p5729_p7 = scmp.lt.s32.totalorder %s5967_s19, %s7081_s0  ;;  %p5730_p10 = scmp.lt.s32.totalorder %s5728_s1, %s5723_s25 }
  0x42   : > { %p5726_p3 = pnand %p5725_p11, %p5724_p0 }
  0x43   : > { %p5731_p4 = por %p5730_p10, %p5729_p7 }
  0x44   : > { %p5727_p6 = pneg %p5726_p3 }
  0x46   : > { %p5732_p5 = pnand %p5731_p4, %p5727_p6 }
  0x48   : > { %5735 = shalt.err (!%p5732_p5)
}
  0x49   : > { %s5736_s18 = scalar_lea.vmem %s5969_s5, 1536  ;;  %s5800_s14 = smov [#allocation4]  }
  0x4a   : > { %p5737_p12 = scmp.ne.s32.totalorder %s5969_s5, %s5736_s18  ;;  %s5741_s17 = sshll.u32 %s5800_s14, 4  ;;  %s5742_s17 = int_to_ptr.vmem [resolvable:$false] %s5741_s17 }
  0x4b   : > { %s5743_s12 = scalar_lea.vmem %s5742_s17, 3072  ;;  %p5744_p0 = scmp.lt.s32.totalorder %s5969_s5, %s5742_s17 }
  0x4c   : > { %p5739_p1 = pnand %p5737_p12, %p5725_p11  ;;  %p5745_p3 = scmp.lt.s32.totalorder %s5743_s12, %s5736_s18 }
  0x4e   : > { %p5740_p2 = pneg %p5739_p1  ;;  %p5746_p8 = por %p5745_p3, %p5744_p0 }
  0x50   : > { %p5747_p9 = pnand %p5746_p8, %p5740_p2 }
  0x52   : > { %5750 = shalt.err (!%p5747_p9)
}
  0x53   : > { %s5801_s25 = smov 256   ;;  %p7105_p11 = scmp.ne.s32.totalorder %s7100_s28, 0 }
  0x54   : > { %5533 = dma.hbm_to_vmem [thread:$0]  (!%p5923_p13), %s5967_s19, 1536, %s5969_s5, %s5971_s26, %s5801_s25, %s5796_s15, %s5797_s16  }
  0x55   : > { %390 = sbr.rel (%p7105_p11) target bundleno = 5120 (0x1400), region = 64  ;;  %s392_s22 = sand.u32 (!%p7105_p11), 1, %s5785_s20  }
  0x56   : > { %s5505_s29 = smul.u32 (!%p7105_p11), 96, %s392_s22  ;;  %s393_s1 = scalar_lea.sflag (!%p7105_p11), [#allocation5], %s392_s22 }
  0x57   : > { %p7106_p8 = scmp.ne.s32.totalorder (!%p7105_p11), %s7099_s27, 0 }
  0x58   : > { %s5997_s24 = scalar_lea.vmem (!%p7105_p11), [#allocation4], %s5505_s29 }
  0x5a   : > { %5768 = dma.done.wait (%p7106_p8), %s393_s1, 1536  }
  0x5b   : > { %5770 = vsyncadd (%p7106_p8), %s393_s1, 4294965760  ;;  %p7107_p9 = scmp.eq.s32.totalorder %s5886_s10, 0 }
  0x5d   : > { %5772 = dma.done.wait (%p7107_p9), [#allocation7], 1408   ;;  %p7108_p13 = pmov %p7107_p9 }
  0x5e   : > { %p7109_p6 = pmov %p7107_p9 }
  0x5f   : > { %5774 = vsyncadd (%p7108_p13), [#allocation7], 4294965888 }
  0x60   : > { %5776 = dma.done.wait (%p7109_p6), [#allocation10], 1024   ;;  %p7110_p7 = pmov %p7109_p6 }
  0x61   : > { %v5802_v1 = vmov 0.0   ;;  %vm5803_vm0 = vmmov 0   ;;  %vm490_vm1 = vcmask 1040384   ;;  %v6017_v2 = vld [vmem:[#allocation6 + $0x10] sm:$0x1]  ;;  %v6019_v3 = vld [vmem:[#allocation6 + $0x8] sm:$0xff] }
  0x62   : > { %5778 = vsyncadd (%p7110_p7), [#allocation10], 4294966272  ;;  %4696 = vmatprep.subr.mxu0 %v5802_v1  ;;  %4702 = vmatprep.mubr.msk.f32.mxu0 %vm5803_vm0, %v5802_v1  ;;  %v6026_v4 = vld [vmem:[#allocation6] sm:$0xff]  ;;  %vm486_vm2 = vcmask 138240   ;;  %v4249_v6 = vld [vmem:[%s5997_s24 + $0x18] sm:$0xff]  ;;  %vm564_vm3 = vcmask 523264  }
  0x63   : > { %4723 = vmatprep.subr.mxu1 %v5802_v1  ;;  %4729 = vmatprep.mubr.msk.f32.mxu1 %vm5803_vm0, %v5802_v1  ;;  %v479_v5 = vld [vmem:[%s5997_s24] sm:$0xff]  ;;  %v4243_v7 = vld [vmem:[%s5997_s24 + $0x8] sm:$0xff]  ;;  %v4246_v8 = vld [vmem:[%s5997_s24 + $0x10] sm:$0xff]  ;;  %p446_p10 = scmp.lt.s32.totalorder %s5886_s10, 1  ;;  %vm4132_vm4 = vcmask 7168  }
  0x64   : > { %4697 = vmatpush3.msk.msra.mxu0 %vm490_vm1, %v6017_v2  ;;  %4724 = vmatpush3.msk.msra.mxu1 %vm490_vm1, %v6017_v2  ;;  %v4255_v9 = vld [vmem:[%s5997_s24 + $0x28] sm:$0xff]  ;;  %v4252_v10 = vld [vmem:[%s5997_s24 + $0x20] sm:$0xff]  ;;  %v4261_v11 = vld [vmem:[%s5997_s24 + $0x38] sm:$0xff] }
  0x65   : > { %4698 = vmatprep.subr.mxu0 %v5802_v1  ;;  %4725 = vmatprep.subr.mxu1 %v5802_v1  ;;  %v4258_v12 = vld [vmem:[%s5997_s24 + $0x30] sm:$0xff]  ;;  %v4267_v13 = vld [vmem:[%s5997_s24 + $0x48] sm:$0xff]  ;;  %v4264_v14 = vld [vmem:[%s5997_s24 + $0x40] sm:$0xff]  ;;  %s7117_s10 = smov (!%p446_p10, %s5886_s10), 1 }
  0x66   : > { %4699 = vmatpush3.msra.mxu0 %v6019_v3  ;;  %4726 = vmatpush3.msra.mxu1 %v6019_v3  ;;  %v4273_v15 = vld [vmem:[%s5997_s24 + $0x58] sm:$0xff]  ;;  %v4270_v16 = vld [vmem:[%s5997_s24 + $0x50] sm:$0xff]  ;;  %v6177_v21 = vld [vmem:[%s7083_s2 + $0x28] sm:$0xff]  ;;  %s4239_s12 = sshll.u32 %s7117_s10, 3 }
  0x67   : > { %4700 = vmatprep.subr.mxu0 %v5802_v1  ;;  %4727 = vmatprep.subr.mxu1 %v5802_v1  ;;  %v6151_v17 = vld [vmem:[%s7085_s4 + $0x38] sm:$0xff]  ;;  %v6165_v19 = vld [vmem:[%s7085_s4 + $0x30] sm:$0xff]  ;;  %v6184_v22 = vld [vmem:[%s7085_s4 + $0x28] sm:$0xff]  ;;  %s449_s29 = scalar_lea.vmem %s7092_s11, %s4239_s12 }
  0x68   : > { %4701 = vmatpush3.msra.mxu0 %v6026_v4  ;;  %4728 = vmatpush3.msra.mxu1 %v6026_v4  ;;  %v6156_v18 = vld [vmem:[%s7083_s2 + $0x38] sm:$0xff]  ;;  %v6170_v20 = vld [vmem:[%s7083_s2 + $0x30] sm:$0xff]  ;;  %v6191_v23 = vld [vmem:[%s7083_s2 + $0x20] sm:$0xff] }
  0x69   : > { %4703 = vmatmul.mubr.msk.f32.vlgmr.msra.gmra.mxu0 %vm486_vm2, %v479_v5  ;;  %4705 = vmatprep.subr.mxu0 %v5802_v1  ;;  %v6198_v24 = vld [vmem:[%s7085_s4 + $0x20] sm:$0xff]  ;;  %v6205_v25 = vld [vmem:[%s7083_s2 + $0x18] sm:$0xff]  ;;  %v6219_v27 = vld [vmem:[%s7083_s2 + $0x10] sm:$0xff] }
  0x6a   : > { %4706 = vmatpush3.msk.msra.mxu0 %vm490_vm1, %v6017_v2  ;;  %4711 = vmatprep.mubr.msk.f32.mxu0 %vm5803_vm0, %v5802_v1  ;;  %v6212_v26 = vld [vmem:[%s7085_s4 + $0x18] sm:$0xff]  ;;  %v6226_v28 = vld [vmem:[%s7085_s4 + $0x10] sm:$0xff]  ;;  %v6233_v29 = vld [vmem:[%s7083_s2 + $0x8] sm:$0xff] }
  0x6b   : > { %4707 = vmatprep.subr.mxu0 %v5802_v1  ;;  %4730 = vmatmul.mubr.msk.f32.vlgmr.msra.gmra.mxu1 %vm486_vm2, %v4249_v6  ;;  %v6240_v30 = vld [vmem:[%s7085_s4 + $0x8] sm:$0xff]  ;;  %v6249_v31 = vld [vmem:[%s7085_s4] sm:$0xff] }
  0x6c   : > { %4708 = vmatpush3.msra.mxu0 %v6019_v3  ;;  %4741 = vmatprep.subr.mxu1 %v5802_v1  ;;  %v6254_v32 = vld [vmem:[%s7083_s2] sm:$0xff] }
  0x6d   : > { %4709 = vmatprep.subr.mxu0 %v5802_v1  ;;  %4742 = vmatpush3.msk.msra.mxu1 %vm490_vm1, %v6017_v2  ;;  %v6270_v33 = vld [vmem:[%s7084_s3] ss:$0 sm:$0xff] }
  0x6e   : > { %4710 = vmatpush3.msra.mxu0 %v6026_v4  ;;  %4743 = vmatprep.subr.mxu1 %v5802_v1 }
  0x6f   : > { %4714 = vmatprep.subr.mxu0 %v5802_v1  ;;  %4712 = vmatmul.mubr.msk.f32.vlgmr.msra.gmra.mxu0 %vm486_vm2, %v4243_v7 }
  0x70   : > { %4715 = vmatpush3.msk.msra.mxu0 %vm490_vm1, %v6017_v2  ;;  %4720 = vmatprep.mubr.msk.f32.mxu0 %vm5803_vm0, %v5802_v1 }
  0x71   : > { %4716 = vmatprep.subr.mxu0 %v5802_v1  ;;  %4744 = vmatpush3.msra.mxu1 %v6019_v3 }
  0x72   : > { %4717 = vmatpush3.msra.mxu0 %v6019_v3  ;;  %4745 = vmatprep.subr.mxu1 %v5802_v1 }
  0x73   : > { %4718 = vmatprep.subr.mxu0 %v5802_v1  ;;  %4746 = vmatpush3.msra.mxu1 %v6026_v4 }
  0x74   : > { %4719 = vmatpush3.msra.mxu0 %v6026_v4  ;;  %4747 = vmatprep.mubr.msk.f32.mxu1 %vm5803_vm0, %v5802_v1 }
  0x75   : > { %4732 = vmatprep.subr.mxu0 %v5802_v1  ;;  %4721 = vmatmul.mubr.msk.f32.vlgmr.msra.gmra.mxu0 %vm486_vm2, %v4246_v8 }
  0x76   : > { %4733 = vmatpush3.msk.msra.mxu0 %vm490_vm1, %v6017_v2  ;;  %4748 = vmatmul.mubr.msk.f32.vlgmr.msra.gmra.mxu1 %vm486_vm2, %v4255_v9  ;;  %v6337_v9 = vld [vmem:[%s7087_s6] ss:$0 sm:$0xff] }
  0x77   : > { %4734 = vmatprep.subr.mxu0 %v5802_v1  ;;  %4759 = vmatprep.subr.mxu1 %v5802_v1 }
  0x78   : > { %4735 = vmatpush3.msra.mxu0 %v6019_v3  ;;  %4738 = vmatprep.mubr.msk.f32.mxu0 %vm5803_vm0, %v5802_v1 }
  0x79   : > { %4736 = vmatprep.subr.mxu0 %v5802_v1  ;;  %4760 = vmatpush3.msk.msra.mxu1 %vm490_vm1, %v6017_v2 }
  0x7a   : > { %4737 = vmatpush3.msra.mxu0 %v6026_v4  ;;  %4761 = vmatprep.subr.mxu1 %v5802_v1 }
  0x7b   : > { %4750 = vmatprep.subr.mxu0 %v5802_v1  ;;  %4739 = vmatmul.mubr.msk.f32.vlgmr.msra.gmra.mxu0 %vm486_vm2, %v4252_v10 }
  0x7c   : > { %4751 = vmatpush3.msk.msra.mxu0 %vm490_vm1, %v6017_v2  ;;  %4762 = vmatpush3.msra.mxu1 %v6019_v3 }
  0x7d   : > { %4752 = vmatprep.subr.mxu0 %v5802_v1  ;;  %4763 = vmatprep.subr.mxu1 %v5802_v1 }
  0x7e   : > { %4753 = vmatpush3.msra.mxu0 %v6019_v3  ;;  %4764 = vmatpush3.msra.mxu1 %v6026_v4 }
  0x7f   : > { %4754 = vmatprep.subr.mxu0 %v5802_v1  ;;  %4765 = vmatprep.mubr.msk.f32.mxu1 %vm5803_vm0, %v5802_v1 }
  0x80   : > { %4755 = vmatpush3.msra.mxu0 %v6026_v4  ;;  %4766 = vmatmul.mubr.msk.f32.vlgmr.msra.gmra.mxu1 %vm486_vm2, %v4261_v11 }
  0x81   : > { %4777 = vmatprep.subr.mxu1 %v5802_v1  ;;  %4756 = vmatprep.mubr.msk.f32.mxu0 %vm5803_vm0, %v5802_v1 }
  0x82   : > { %4768 = vmatprep.subr.mxu0 %v5802_v1  ;;  %4778 = vmatpush3.msk.msra.mxu1 %vm490_vm1, %v6017_v2 }
  0x83   : > { %4757 = vmatmul.mubr.msk.f32.vlgmr.msra.gmra.mxu0 %vm486_vm2, %v4258_v12  ;;  %4779 = vmatprep.subr.mxu1 %v5802_v1 }
  0x84   : > { %4769 = vmatpush3.msk.msra.mxu0 %vm490_vm1, %v6017_v2  ;;  %4780 = vmatpush3.msra.mxu1 %v6019_v3 }
  0x85   : > { %4770 = vmatprep.subr.mxu0 %v5802_v1  ;;  %4781 = vmatprep.subr.mxu1 %v5802_v1 }
  0x86   : > { %4771 = vmatpush3.msra.mxu0 %v6019_v3  ;;  %4782 = vmatpush3.msra.mxu1 %v6026_v4 }
  0x87   : > { %4772 = vmatprep.subr.mxu0 %v5802_v1  ;;  %4783 = vmatprep.mubr.msk.f32.mxu1 %vm5803_vm0, %v5802_v1 }
  0x88   : > { %4773 = vmatpush3.msra.mxu0 %v6026_v4  ;;  %4795 = vmatprep.subr.mxu1 %v5802_v1 }
  0x89   : > { %4774 = vmatprep.mubr.msk.f32.mxu0 %vm5803_vm0, %v5802_v1  ;;  %4786 = vmatprep.subr.mxu0 %v5802_v1 }
  0x8a   : > { %4784 = vmatmul.mubr.msk.f32.vlgmr.msra.gmra.mxu1 %vm486_vm2, %v4267_v13  ;;  %4775 = vmatmul.mubr.msk.f32.vlgmr.msra.gmra.mxu0 %vm486_vm2, %v4264_v14 }
  0x8b   : > { %4796 = vmatpush3.msk.msra.mxu1 %vm490_vm1, %v6017_v2  ;;  %4801 = vmatprep.mubr.msk.f32.mxu1 %vm5803_vm0, %v5802_v1 }
  0x8c   : > { %4797 = vmatprep.subr.mxu1 %v5802_v1  ;;  %4787 = vmatpush3.msk.msra.mxu0 %vm490_vm1, %v6017_v2 }
  0x8d   : > { %4798 = vmatpush3.msra.mxu1 %v6019_v3  ;;  %4788 = vmatprep.subr.mxu0 %v5802_v1 }
  0x8e   : > { %4799 = vmatprep.subr.mxu1 %v5802_v1  ;;  %4789 = vmatpush3.msra.mxu0 %v6019_v3 }
  0x8f   : > { %4800 = vmatpush3.msra.mxu1 %v6026_v4  ;;  %4790 = vmatprep.subr.mxu0 %v5802_v1 }
  0x90   : > { %4802 = vmatmul.mubr.msk.f32.vlgmr.msra.gmra.mxu1 %vm486_vm2, %v4273_v15  ;;  %4791 = vmatpush3.msra.mxu0 %v6026_v4 }
  0x91   : > { %4792 = vmatprep.mubr.msk.f32.mxu0 %vm5803_vm0, %v5802_v1  ;;  %4804 = vmatprep.subr.mxu0 %v5802_v1 }
  0x92   : > { %4823 = vmatprep.subr.mxu1 %v5802_v1  ;;  %4793 = vmatmul.mubr.msk.f32.vlgmr.msra.gmra.mxu0 %vm486_vm2, %v4270_v16 }
  0x93   : > { %4824 = vmatpush3.msra.mxu1 %v6156_v18  ;;  %4805 = vmatpush3.msra.mxu0 %v6151_v17 }
  0x94   : > { %4825 = vmatprep.subr.mxu1 %v5802_v1  ;;  %4806 = vmatprep.subr.mxu0 %v5802_v1 }
  0x95   : > { %4826 = vmatpush3.msra.mxu1 %v6170_v20  ;;  %4807 = vmatpush3.msra.mxu0 %v6165_v19 }
  0x96   : > { %4827 = vmatprep.subr.mxu1 %v5802_v1  ;;  %4808 = vmatprep.subr.mxu0 %v5802_v1 }
  0x97   : > { %4828 = vmatpush3.msra.mxu1 %v6177_v21  ;;  %4809 = vmatpush3.msra.mxu0 %v6184_v22 }
  0x98   : > { %4829 = vmatprep.subr.mxu1 %v5802_v1  ;;  %4810 = vmatprep.subr.mxu0 %v5802_v1 }
  0x99   : > { %4830 = vmatpush3.msra.mxu1 %v6191_v23  ;;  %4811 = vmatpush3.msra.mxu0 %v6198_v24 }
  0x9a   : > { %4831 = vmatprep.subr.mxu1 %v5802_v1  ;;  %4812 = vmatprep.subr.mxu0 %v5802_v1 }
  0x9b   : > { %4832 = vmatpush3.msra.mxu1 %v6205_v25  ;;  %4813 = vmatpush3.msra.mxu0 %v6212_v26 }
  0x9c   : > { %4833 = vmatprep.subr.mxu1 %v5802_v1  ;;  %4814 = vmatprep.subr.mxu0 %v5802_v1 }
  0x9d   : > { %4834 = vmatpush3.msra.mxu1 %v6219_v27  ;;  %4815 = vmatpush3.msra.mxu0 %v6226_v28 }
  0x9e   : > { %4835 = vmatprep.subr.mxu1 %v5802_v1  ;;  %4816 = vmatprep.subr.mxu0 %v5802_v1 }
  0x9f   : > { %4836 = vmatpush3.msra.mxu1 %v6233_v29  ;;  %4817 = vmatpush3.msra.mxu0 %v6240_v30 }
  0xa0   : > { %4837 = vmatprep.subr.mxu1 %v5802_v1  ;;  %4818 = vmatprep.subr.mxu0 %v5802_v1 }
  0xa1   : > { %4820 = vmatprep.mubr.msk.f32.mxu0 %vm5803_vm0, %v5802_v1  ;;  %4819 = vmatpush3.msra.mxu0 %v6249_v31 }
  0xa2   : > { %4838 = vmatpush3.msra.mxu1 %v6254_v32  ;;  %4839 = vmatprep.mubr.msk.f32.mxu1 %vm5803_vm0, %v5802_v1 }
  0xa3   : > { %4842 = vmatprep.subr.mxu0 %v5802_v1  ;;  %4861 = vmatprep.subr.mxu1 %v5802_v1 }
 0x129   : > { %v560_v34 = vpop.f32.mrf.mxu0 }
 0x12a   : > { %v561_v35 = vadd.f32 %v6270_v33, %v560_v34 }
 0x12b   : > { %v4704_v36 = vpop.f32.mrf.mxu0  ;;  %v791_v37 = vpop.f32.mrf.mxu1 }
 0x12c   : > { %565 = vst.msk [vmem:[#allocation2] sm:$0xff] %vm564_vm3, %v561_v35  ;;  %v792_v38 = vadd.f32 %v6270_v33, %v791_v37 }
 0x12d   : > { %v4731_v39 = vpop.f32.mrf.mxu1 }
 0x12e   : > { %796 = vst.msk [vmem:[#allocation2 + $0x18] sm:$0xff] %vm564_vm3, %v792_v38 }
 0x12f   : > { %v637_v40 = vpop.f32.mrf.mxu0 }
 0x130   : > { %v638_v41 = vadd.f32 %v6270_v33, %v637_v40 }
 0x131   : > { %v4713_v42 = vpop.f32.mrf.mxu0 }
 0x132   : > { %642 = vst.msk [vmem:[#allocation2 + $0x8] sm:$0xff] %vm564_vm3, %v638_v41 }
 0x133   : > { %v1413_v43 = vld [vmem:[#allocation2] sm:$0xff] }
 0x134   : > { %5581 = vtanh.f32 %v1413_v43 }
 0x135   : > { %v714_v44 = vpop.f32.mrf.mxu0  ;;  %v1789_v43 = vld [vmem:[#allocation2 + $0x18] sm:$0xff] }
 0x136   : > { %v945_v45 = vpop.f32.mrf.mxu1  ;;  %v715_v46 = vadd.f32 %v6270_v33, %v714_v44 }
 0x137   : > { %v946_v47 = vadd.f32 %v6270_v33, %v945_v45  ;;  %v4722_v48 = vpop.f32.mrf.mxu0 }
 0x138   : > { %v4749_v49 = vpop.f32.mrf.mxu1  ;;  %719 = vst.msk [vmem:[#allocation2 + $0x10] sm:$0xff] %vm564_vm3, %v715_v46 }
 0x139   : > { %950 = vst.msk [vmem:[#allocation2 + $0x28] sm:$0xff] %vm564_vm3, %v946_v47  ;;  %v1495_v10 = vld [vmem:[#allocation2 + $0x8] sm:$0xff] }
 0x13b   : > { %v868_v50 = vpop.f32.mrf.mxu0 }
 0x13c   : > { %v869_v51 = vadd.f32 %v6270_v33, %v868_v50 }
 0x13d   : > { %v4740_v52 = vpop.f32.mrf.mxu0 }
 0x13e   : > { %873 = vst.msk [vmem:[#allocation2 + $0x20] sm:$0xff] %vm564_vm3, %v869_v51 }
 0x13f   : > { %v1642_v34 = vld [vmem:[#allocation2 + $0x10] sm:$0xff] }
 0x140   : > { %v1099_v53 = vpop.f32.mrf.mxu1 }
 0x141   : > { %v5582_v54 = vpop.eup %5581  ;;  %v1100_v55 = vadd.f32 %v6270_v33, %v1099_v53 }
 0x142   : > { %4821 = vmatmul.mubr.msk.f32.vlgmr.msra.gmra.mxu0 %vm564_vm3, %v5582_v54  ;;  %4840 = vmatmul.mubr.msk.f32.vlgmr.msra.gmra.mxu1 %vm564_vm3, %v5582_v54  ;;  %v4767_v56 = vpop.f32.mrf.mxu1 }
 0x143   : > { %1104 = vst.msk [vmem:[#allocation2 + $0x38] sm:$0xff] %vm564_vm3, %v1100_v55  ;;  %v1022_v57 = vpop.f32.mrf.mxu0  ;;  %4843 = vmatpush3.msra.mxu0 %v6151_v17  ;;  %4862 = vmatpush3.msra.mxu1 %v6156_v18 }
 0x144   : > { %v1023_v58 = vadd.f32 %v6270_v33, %v1022_v57  ;;  %4844 = vmatprep.subr.mxu0 %v5802_v1  ;;  %4863 = vmatprep.subr.mxu1 %v5802_v1 }
 0x145   : > { %v4758_v59 = vpop.f32.mrf.mxu0  ;;  %4845 = vmatpush3.msra.mxu0 %v6165_v19  ;;  %4864 = vmatpush3.msra.mxu1 %v6170_v20  ;;  %v1936_v50 = vld [vmem:[#allocation2 + $0x20] sm:$0xff] }
 0x146   : > { %1027 = vst.msk [vmem:[#allocation2 + $0x30] sm:$0xff] %vm564_vm3, %v1023_v58  ;;  %4846 = vmatprep.subr.mxu0 %v5802_v1  ;;  %4865 = vmatprep.subr.mxu1 %v5802_v1  ;;  %v2083_v59 = vld [vmem:[#allocation2 + $0x28] sm:$0xff] }
 0x147   : > { %4847 = vmatpush3.msra.mxu0 %v6184_v22  ;;  %4866 = vmatpush3.msra.mxu1 %v6177_v21 }
 0x148   : > { %4848 = vmatprep.subr.mxu0 %v5802_v1  ;;  %4867 = vmatprep.subr.mxu1 %v5802_v1 }
 0x149   : > { %4849 = vmatpush3.msra.mxu0 %v6198_v24  ;;  %4868 = vmatpush3.msra.mxu1 %v6191_v23 }
 0x14a   : > { %4850 = vmatprep.subr.mxu0 %v5802_v1  ;;  %4869 = vmatprep.subr.mxu1 %v5802_v1  ;;  %v1253_v60 = vpop.f32.mrf.mxu1  ;;  %v1176_v63 = vpop.f32.mrf.mxu0 }
 0x14b   : > { %4851 = vmatpush3.msra.mxu0 %v6212_v26  ;;  %4870 = vmatpush3.msra.mxu1 %v6205_v25  ;;  %v1254_v61 = vadd.f32 %v6270_v33, %v1253_v60  ;;  %v1177_v0 = vadd.f32 %v6270_v33, %v1176_v63 }
 0x14c   : > { %4852 = vmatprep.subr.mxu0 %v5802_v1  ;;  %4871 = vmatprep.subr.mxu1 %v5802_v1  ;;  %v4785_v62 = vpop.f32.mrf.mxu1  ;;  %v4776_v2 = vpop.f32.mrf.mxu0 }
 0x14d   : > { %4853 = vmatpush3.msra.mxu0 %v6226_v28  ;;  %4872 = vmatpush3.msra.mxu1 %v6219_v27  ;;  %1258 = vst.msk [vmem:[#allocation2 + $0x48] sm:$0xff] %vm564_vm3, %v1254_v61  ;;  %1181 = vst.msk [vmem:[#allocation2 + $0x40] sm:$0xff] %vm564_vm3, %v1177_v0 }
 0x14e   : > { %4854 = vmatprep.subr.mxu0 %v5802_v1  ;;  %4873 = vmatprep.subr.mxu1 %v5802_v1 }
 0x14f   : > { %4855 = vmatpush3.msra.mxu0 %v6240_v30  ;;  %4874 = vmatpush3.msra.mxu1 %v6233_v29 }
 0x150   : > { %4856 = vmatprep.subr.mxu0 %v5802_v1  ;;  %4875 = vmatprep.subr.mxu1 %v5802_v1  ;;  %v1407_v3 = vpop.f32.mrf.mxu1 }
 0x151   : > { %4857 = vmatpush3.msra.mxu0 %v6249_v31  ;;  %4858 = vmatprep.mubr.msk.f32.mxu0 %vm5803_vm0, %v5802_v1  ;;  %v1408_v4 = vadd.f32 %v6270_v33, %v1407_v3  ;;  %v2230_v3 = vld [vmem:[#allocation2 + $0x30] sm:$0xff] }
 0x152   : > { %4876 = vmatpush3.msra.mxu1 %v6254_v32  ;;  %4877 = vmatprep.mubr.msk.f32.mxu1 %vm5803_vm0, %v5802_v1  ;;  %v4803_v5 = vpop.f32.mrf.mxu1  ;;  %v1330_v6 = vpop.f32.mrf.mxu0 }
 0x153   : > { %4880 = vmatprep.subr.mxu0 %v5802_v1  ;;  %4899 = vmatprep.subr.mxu1 %v5802_v1  ;;  %1412 = vst.msk [vmem:[#allocation2 + $0x58] sm:$0xff] %vm564_vm3, %v1408_v4  ;;  %v1331_v7 = vadd.f32 %v6270_v33, %v1330_v6 }
 0x154   : > { %v4794_v8 = vpop.f32.mrf.mxu0 }
 0x155   : > { %1335 = vst.msk [vmem:[#allocation2 + $0x50] sm:$0xff] %vm564_vm3, %v1331_v7 }
 0x202   : > { %v1490_v11 = vpop.f32.mrf.mxu0  ;;  %v1562_v12 = vpop.f32.mrf.mxu1 }
 0x203   : > { %v1491_v13 = vadd.f32 %v6337_v9, %v1490_v11  ;;  %v1566_v14 = vadd.f32 %v1562_v12, %v1495_v10 }
 0x204   : > { %v4822_v15 = vpop.f32.mrf.mxu0  ;;  %v4841_v16 = vpop.f32.mrf.mxu1 }
 0x205   : > { %1494 = vst.msk [vmem:[#allocation2] sm:$0xff] %vm564_vm3, %v1491_v13  ;;  %5583 = vtanh.f32 %v1566_v14  ;;  %v2377_v13 = vld [vmem:[#allocation2 + $0x38] sm:$0xff] }
 0x212   : > { %v5584_v33 = vpop.eup %5583 }
 0x213   : > { %4859 = vmatmul.mubr.msk.f32.vlgmr.msra.gmra.mxu0 %vm564_vm3, %v5584_v33  ;;  %4878 = vmatmul.mubr.msk.f32.vlgmr.msra.gmra.mxu1 %vm564_vm3, %v5584_v33 }
 0x214   : > { %4881 = vmatpush3.msra.mxu0 %v6151_v17  ;;  %4900 = vmatpush3.msra.mxu1 %v6156_v18 }
 0x215   : > { %4882 = vmatprep.subr.mxu0 %v5802_v1  ;;  %4901 = vmatprep.subr.mxu1 %v5802_v1 }
 0x216   : > { %4883 = vmatpush3.msra.mxu0 %v6165_v19  ;;  %4902 = vmatpush3.msra.mxu1 %v6170_v20 }
 0x217   : > { %4884 = vmatprep.subr.mxu0 %v5802_v1  ;;  %4903 = vmatprep.subr.mxu1 %v5802_v1 }
 0x218   : > { %4885 = vmatpush3.msra.mxu0 %v6184_v22  ;;  %4904 = vmatpush3.msra.mxu1 %v6177_v21 }
 0x219   : > { %4886 = vmatprep.subr.mxu0 %v5802_v1  ;;  %4905 = vmatprep.subr.mxu1 %v5802_v1 }
 0x21a   : > { %4887 = vmatpush3.msra.mxu0 %v6198_v24  ;;  %4906 = vmatpush3.msra.mxu1 %v6191_v23 }
 0x21b   : > { %4888 = vmatprep.subr.mxu0 %v5802_v1  ;;  %4907 = vmatprep.subr.mxu1 %v5802_v1 }
 0x21c   : > { %4889 = vmatpush3.msra.mxu0 %v6212_v26  ;;  %4908 = vmatpush3.msra.mxu1 %v6205_v25 }
 0x21d   : > { %4890 = vmatprep.subr.mxu0 %v5802_v1  ;;  %4909 = vmatprep.subr.mxu1 %v5802_v1 }
 0x21e   : > { %4891 = vmatpush3.msra.mxu0 %v6226_v28  ;;  %4910 = vmatpush3.msra.mxu1 %v6219_v27 }
 0x21f   : > { %4892 = vmatprep.subr.mxu0 %v5802_v1  ;;  %4911 = vmatprep.subr.mxu1 %v5802_v1 }
 0x220   : > { %4893 = vmatpush3.msra.mxu0 %v6240_v30  ;;  %4912 = vmatpush3.msra.mxu1 %v6233_v29 }
 0x221   : > { %4894 = vmatprep.subr.mxu0 %v5802_v1  ;;  %4913 = vmatprep.subr.mxu1 %v5802_v1 }
 0x222   : > { %4895 = vmatpush3.msra.mxu0 %v6249_v31  ;;  %4896 = vmatprep.mubr.msk.f32.mxu0 %vm5803_vm0, %v5802_v1 }
 0x223   : > { %4914 = vmatpush3.msra.mxu1 %v6254_v32  ;;  %4915 = vmatprep.mubr.msk.f32.mxu1 %vm5803_vm0, %v5802_v1 }
 0x224   : > { %4918 = vmatprep.subr.mxu0 %v5802_v1  ;;  %4937 = vmatprep.subr.mxu1 %v5802_v1 }
 0x2d3   : > { %v1637_v35 = vpop.f32.mrf.mxu0  ;;  %v1709_v36 = vpop.f32.mrf.mxu1 }
 0x2d4   : > { %v1638_v37 = vadd.f32 %v6337_v9, %v1637_v35  ;;  %v1713_v38 = vadd.f32 %v1709_v36, %v1642_v34  ;;  %v2524_v36 = vld [vmem:[#allocation2 + $0x40] sm:$0xff] }
 0x2d5   : > { %v4860_v39 = vpop.f32.mrf.mxu0  ;;  %v4879_v40 = vpop.f32.mrf.mxu1 }
 0x2d6   : > { %1641 = vst.msk [vmem:[#allocation2 + $0x8] sm:$0xff] %vm564_vm3, %v1638_v37  ;;  %5585 = vtanh.f32 %v1713_v38 }
 0x2e3   : > { %v5586_v41 = vpop.eup %5585 }
 0x2e4   : > { %4897 = vmatmul.mubr.msk.f32.vlgmr.msra.gmra.mxu0 %vm564_vm3, %v5586_v41  ;;  %4916 = vmatmul.mubr.msk.f32.vlgmr.msra.gmra.mxu1 %vm564_vm3, %v5586_v41 }
 0x2e5   : > { %4919 = vmatpush3.msra.mxu0 %v6151_v17  ;;  %4938 = vmatpush3.msra.mxu1 %v6156_v18 }
 0x2e6   : > { %4920 = vmatprep.subr.mxu0 %v5802_v1  ;;  %4939 = vmatprep.subr.mxu1 %v5802_v1 }
 0x2e7   : > { %4921 = vmatpush3.msra.mxu0 %v6165_v19  ;;  %4940 = vmatpush3.msra.mxu1 %v6170_v20 }
 0x2e8   : > { %4922 = vmatprep.subr.mxu0 %v5802_v1  ;;  %4941 = vmatprep.subr.mxu1 %v5802_v1 }
 0x2e9   : > { %4923 = vmatpush3.msra.mxu0 %v6184_v22  ;;  %4942 = vmatpush3.msra.mxu1 %v6177_v21 }
 0x2ea   : > { %4924 = vmatprep.subr.mxu0 %v5802_v1  ;;  %4943 = vmatprep.subr.mxu1 %v5802_v1 }
 0x2eb   : > { %4925 = vmatpush3.msra.mxu0 %v6198_v24  ;;  %4944 = vmatpush3.msra.mxu1 %v6191_v23 }
 0x2ec   : > { %4926 = vmatprep.subr.mxu0 %v5802_v1  ;;  %4945 = vmatprep.subr.mxu1 %v5802_v1 }
 0x2ed   : > { %4927 = vmatpush3.msra.mxu0 %v6212_v26  ;;  %4946 = vmatpush3.msra.mxu1 %v6205_v25 }
 0x2ee   : > { %4928 = vmatprep.subr.mxu0 %v5802_v1  ;;  %4947 = vmatprep.subr.mxu1 %v5802_v1 }
 0x2ef   : > { %4929 = vmatpush3.msra.mxu0 %v6226_v28  ;;  %4948 = vmatpush3.msra.mxu1 %v6219_v27 }
 0x2f0   : > { %4930 = vmatprep.subr.mxu0 %v5802_v1  ;;  %4949 = vmatprep.subr.mxu1 %v5802_v1 }
 0x2f1   : > { %4931 = vmatpush3.msra.mxu0 %v6240_v30  ;;  %4950 = vmatpush3.msra.mxu1 %v6233_v29 }
 0x2f2   : > { %4932 = vmatprep.subr.mxu0 %v5802_v1  ;;  %4951 = vmatprep.subr.mxu1 %v5802_v1 }
 0x2f3   : > { %4933 = vmatpush3.msra.mxu0 %v6249_v31  ;;  %4934 = vmatprep.mubr.msk.f32.mxu0 %vm5803_vm0, %v5802_v1 }
 0x2f4   : > { %4952 = vmatpush3.msra.mxu1 %v6254_v32  ;;  %4953 = vmatprep.mubr.msk.f32.mxu1 %vm5803_vm0, %v5802_v1 }
 0x2f5   : > { %4956 = vmatprep.subr.mxu0 %v5802_v1  ;;  %4975 = vmatprep.subr.mxu1 %v5802_v1 }
 0x3a4   : > { %v1784_v42 = vpop.f32.mrf.mxu0  ;;  %v1856_v44 = vpop.f32.mrf.mxu1 }
 0x3a5   : > { %v1785_v45 = vadd.f32 %v6337_v9, %v1784_v42  ;;  %v1860_v46 = vadd.f32 %v1856_v44, %v1789_v43  ;;  %v5634_v44 = vld [vmem:[%s7085_s4 + $0x28] sm:$0xff] }
 0x3a6   : > { %v4898_v47 = vpop.f32.mrf.mxu0  ;;  %v4917_v48 = vpop.f32.mrf.mxu1 }
 0x3a7   : > { %1788 = vst.msk [vmem:[#allocation2 + $0x10] sm:$0xff] %vm564_vm3, %v1785_v45  ;;  %5587 = vtanh.f32 %v1860_v46  ;;  %v5635_v45 = vld [vmem:[%s7083_s2 + $0x20] sm:$0xff]  ;;  %v5637_v47 = vld [vmem:[%s7083_s2 + $0x18] sm:$0xff] }
 0x3a8   : > { %v5636_v46 = vld [vmem:[%s7085_s4 + $0x20] sm:$0xff]  ;;  %v5638_v48 = vld [vmem:[%s7085_s4 + $0x18] sm:$0xff] }
 0x3b4   : > { %v5588_v49 = vpop.eup %5587 }
 0x3b5   : > { %4935 = vmatmul.mubr.msk.f32.vlgmr.msra.gmra.mxu0 %vm564_vm3, %v5588_v49  ;;  %4954 = vmatmul.mubr.msk.f32.vlgmr.msra.gmra.mxu1 %vm564_vm3, %v5588_v49  ;;  %v5639_v49 = vld [vmem:[%s7083_s2 + $0x10] sm:$0xff] }
 0x3b6   : > { %4957 = vmatpush3.msra.mxu0 %v6151_v17  ;;  %4976 = vmatpush3.msra.mxu1 %v6156_v18 }
 0x3b7   : > { %4958 = vmatprep.subr.mxu0 %v5802_v1  ;;  %4977 = vmatprep.subr.mxu1 %v5802_v1 }
 0x3b8   : > { %4959 = vmatpush3.msra.mxu0 %v6165_v19  ;;  %4978 = vmatpush3.msra.mxu1 %v6170_v20 }
 0x3b9   : > { %4960 = vmatprep.subr.mxu0 %v5802_v1  ;;  %4979 = vmatprep.subr.mxu1 %v5802_v1 }
 0x3ba   : > { %4961 = vmatpush3.msra.mxu0 %v6184_v22  ;;  %4980 = vmatpush3.msra.mxu1 %v6177_v21 }
 0x3bb   : > { %4962 = vmatprep.subr.mxu0 %v5802_v1  ;;  %4981 = vmatprep.subr.mxu1 %v5802_v1 }
 0x3bc   : > { %4963 = vmatpush3.msra.mxu0 %v6198_v24  ;;  %4982 = vmatpush3.msra.mxu1 %v6191_v23 }
 0x3bd   : > { %4964 = vmatprep.subr.mxu0 %v5802_v1  ;;  %4983 = vmatprep.subr.mxu1 %v5802_v1 }
 0x3be   : > { %4965 = vmatpush3.msra.mxu0 %v6212_v26  ;;  %4984 = vmatpush3.msra.mxu1 %v6205_v25 }
 0x3bf   : > { %4966 = vmatprep.subr.mxu0 %v5802_v1  ;;  %4985 = vmatprep.subr.mxu1 %v5802_v1 }
 0x3c0   : > { %4967 = vmatpush3.msra.mxu0 %v6226_v28  ;;  %4986 = vmatpush3.msra.mxu1 %v6219_v27 }
 0x3c1   : > { %4968 = vmatprep.subr.mxu0 %v5802_v1  ;;  %4987 = vmatprep.subr.mxu1 %v5802_v1 }
 0x3c2   : > { %4969 = vmatpush3.msra.mxu0 %v6240_v30  ;;  %4988 = vmatpush3.msra.mxu1 %v6233_v29 }
 0x3c3   : > { %4970 = vmatprep.subr.mxu0 %v5802_v1  ;;  %4989 = vmatprep.subr.mxu1 %v5802_v1 }
 0x3c4   : > { %4971 = vmatpush3.msra.mxu0 %v6249_v31  ;;  %4972 = vmatprep.mubr.msk.f32.mxu0 %vm5803_vm0, %v5802_v1 }
 0x3c5   : > { %4990 = vmatpush3.msra.mxu1 %v6254_v32  ;;  %4991 = vmatprep.mubr.msk.f32.mxu1 %vm5803_vm0, %v5802_v1 }
 0x3c6   : > { %4994 = vmatprep.subr.mxu0 %v5802_v1  ;;  %5013 = vmatprep.subr.mxu1 %v5802_v1 }
 0x475   : > { %v1931_v51 = vpop.f32.mrf.mxu0  ;;  %v2003_v52 = vpop.f32.mrf.mxu1 }
 0x476   : > { %v1932_v53 = vadd.f32 %v6337_v9, %v1931_v51  ;;  %v2007_v54 = vadd.f32 %v2003_v52, %v1936_v50  ;;  %v5640_v50 = vld [vmem:[%s7085_s4 + $0x10] sm:$0xff]  ;;  %v5641_v51 = vld [vmem:[%s7083_s2 + $0x8] sm:$0xff] }
 0x477   : > { %v4936_v55 = vpop.f32.mrf.mxu0  ;;  %v4955_v56 = vpop.f32.mrf.mxu1  ;;  %v2818_v52 = vld [vmem:[#allocation2 + $0x50] sm:$0xff] }
 0x478   : > { %1935 = vst.msk [vmem:[#allocation2 + $0x18] sm:$0xff] %vm564_vm3, %v1932_v53  ;;  %5589 = vtanh.f32 %v2007_v54 }
 0x485   : > { %v5590_v57 = vpop.eup %5589 }
 0x486   : > { %4973 = vmatmul.mubr.msk.f32.vlgmr.msra.gmra.mxu0 %vm564_vm3, %v5590_v57  ;;  %4992 = vmatmul.mubr.msk.f32.vlgmr.msra.gmra.mxu1 %vm564_vm3, %v5590_v57 }
 0x487   : > { %4995 = vmatpush3.msra.mxu0 %v6151_v17  ;;  %5014 = vmatpush3.msra.mxu1 %v6156_v18 }
 0x488   : > { %4996 = vmatprep.subr.mxu0 %v5802_v1  ;;  %5015 = vmatprep.subr.mxu1 %v5802_v1 }
 0x489   : > { %4997 = vmatpush3.msra.mxu0 %v6165_v19  ;;  %5016 = vmatpush3.msra.mxu1 %v6170_v20 }
 0x48a   : > { %4998 = vmatprep.subr.mxu0 %v5802_v1  ;;  %5017 = vmatprep.subr.mxu1 %v5802_v1 }
 0x48b   : > { %4999 = vmatpush3.msra.mxu0 %v6184_v22  ;;  %5018 = vmatpush3.msra.mxu1 %v6177_v21 }
 0x48c   : > { %5000 = vmatprep.subr.mxu0 %v5802_v1  ;;  %5019 = vmatprep.subr.mxu1 %v5802_v1 }
 0x48d   : > { %5001 = vmatpush3.msra.mxu0 %v6198_v24  ;;  %5020 = vmatpush3.msra.mxu1 %v6191_v23 }
 0x48e   : > { %5002 = vmatprep.subr.mxu0 %v5802_v1  ;;  %5021 = vmatprep.subr.mxu1 %v5802_v1 }
 0x48f   : > { %5003 = vmatpush3.msra.mxu0 %v6212_v26  ;;  %5022 = vmatpush3.msra.mxu1 %v6205_v25 }
 0x490   : > { %5004 = vmatprep.subr.mxu0 %v5802_v1  ;;  %5023 = vmatprep.subr.mxu1 %v5802_v1 }
 0x491   : > { %5005 = vmatpush3.msra.mxu0 %v6226_v28  ;;  %5024 = vmatpush3.msra.mxu1 %v6219_v27 }
 0x492   : > { %5006 = vmatprep.subr.mxu0 %v5802_v1  ;;  %5025 = vmatprep.subr.mxu1 %v5802_v1 }
 0x493   : > { %5007 = vmatpush3.msra.mxu0 %v6240_v30  ;;  %5026 = vmatpush3.msra.mxu1 %v6233_v29 }
 0x494   : > { %5008 = vmatprep.subr.mxu0 %v5802_v1  ;;  %5027 = vmatprep.subr.mxu1 %v5802_v1 }
 0x495   : > { %5009 = vmatpush3.msra.mxu0 %v6249_v31  ;;  %5010 = vmatprep.mubr.msk.f32.mxu0 %vm5803_vm0, %v5802_v1 }
 0x496   : > { %5028 = vmatpush3.msra.mxu1 %v6254_v32  ;;  %5029 = vmatprep.mubr.msk.f32.mxu1 %vm5803_vm0, %v5802_v1 }
 0x497   : > { %5032 = vmatprep.subr.mxu0 %v5802_v1  ;;  %5051 = vmatprep.subr.mxu1 %v5802_v1 }
 0x546   : > { %v2078_v58 = vpop.f32.mrf.mxu0  ;;  %v2150_v60 = vpop.f32.mrf.mxu1 }
 0x547   : > { %v2079_v61 = vadd.f32 %v6337_v9, %v2078_v58  ;;  %v2154_v62 = vadd.f32 %v2150_v60, %v2083_v59  ;;  %v3112_v58 = vld [vmem:[#allocation2] sm:$0xff]  ;;  %v6737_v59 = vld [vmem:[#allocation8 + $0x30] sm:$0xff] }
 0x548   : > { %v4974_v63 = vpop.f32.mrf.mxu0  ;;  %v4993_v0 = vpop.f32.mrf.mxu1  ;;  %v6743_v60 = vld [vmem:[#allocation8 + $0x28] sm:$0xff] }
 0x549   : > { %2082 = vst.msk [vmem:[#allocation2 + $0x20] sm:$0xff] %vm564_vm3, %v2079_v61  ;;  %5591 = vtanh.f32 %v2154_v62  ;;  %v6749_v61 = vld [vmem:[#allocation8 + $0x20] sm:$0xff]  ;;  %v6755_v62 = vld [vmem:[#allocation8 + $0x18] sm:$0xff]  ;;  %v6760_v63 = vld [vmem:[#allocation8 + $0x10] sm:$0xff] }
 0x54a   : > { %v6765_v0 = vld [vmem:[#allocation8 + $0x8] sm:$0xff] }
 0x556   : > { %v5592_v2 = vpop.eup %5591 }
 0x557   : > { %5011 = vmatmul.mubr.msk.f32.vlgmr.msra.gmra.mxu0 %vm564_vm3, %v5592_v2  ;;  %5030 = vmatmul.mubr.msk.f32.vlgmr.msra.gmra.mxu1 %vm564_vm3, %v5592_v2  ;;  %v6770_v2 = vld [vmem:[#allocation8] sm:$0xff] }
 0x558   : > { %5033 = vmatpush3.msra.mxu0 %v6151_v17  ;;  %5052 = vmatpush3.msra.mxu1 %v6156_v18 }
 0x559   : > { %5034 = vmatprep.subr.mxu0 %v5802_v1  ;;  %5053 = vmatprep.subr.mxu1 %v5802_v1 }
 0x55a   : > { %5035 = vmatpush3.msra.mxu0 %v6165_v19  ;;  %5054 = vmatpush3.msra.mxu1 %v6170_v20 }
 0x55b   : > { %5036 = vmatprep.subr.mxu0 %v5802_v1  ;;  %5055 = vmatprep.subr.mxu1 %v5802_v1 }
 0x55c   : > { %5037 = vmatpush3.msra.mxu0 %v6184_v22  ;;  %5056 = vmatpush3.msra.mxu1 %v6177_v21 }
 0x55d   : > { %5038 = vmatprep.subr.mxu0 %v5802_v1  ;;  %5057 = vmatprep.subr.mxu1 %v5802_v1 }
 0x55e   : > { %5039 = vmatpush3.msra.mxu0 %v6198_v24  ;;  %5058 = vmatpush3.msra.mxu1 %v6191_v23 }
 0x55f   : > { %5040 = vmatprep.subr.mxu0 %v5802_v1  ;;  %5059 = vmatprep.subr.mxu1 %v5802_v1 }
 0x560   : > { %5041 = vmatpush3.msra.mxu0 %v6212_v26  ;;  %5060 = vmatpush3.msra.mxu1 %v6205_v25 }
 0x561   : > { %5042 = vmatprep.subr.mxu0 %v5802_v1  ;;  %5061 = vmatprep.subr.mxu1 %v5802_v1 }
 0x562   : > { %5043 = vmatpush3.msra.mxu0 %v6226_v28  ;;  %5062 = vmatpush3.msra.mxu1 %v6219_v27 }
 0x563   : > { %5044 = vmatprep.subr.mxu0 %v5802_v1  ;;  %5063 = vmatprep.subr.mxu1 %v5802_v1 }
 0x564   : > { %5045 = vmatpush3.msra.mxu0 %v6240_v30  ;;  %5064 = vmatpush3.msra.mxu1 %v6233_v29 }
 0x565   : > { %5046 = vmatprep.subr.mxu0 %v5802_v1  ;;  %5065 = vmatprep.subr.mxu1 %v5802_v1 }
 0x566   : > { %5047 = vmatpush3.msra.mxu0 %v6249_v31  ;;  %5048 = vmatprep.mubr.msk.f32.mxu0 %vm5803_vm0, %v5802_v1 }
 0x567   : > { %5066 = vmatpush3.msra.mxu1 %v6254_v32  ;;  %5067 = vmatprep.mubr.msk.f32.mxu1 %vm5803_vm0, %v5802_v1 }
 0x568   : > { %5070 = vmatprep.subr.mxu0 %v5802_v1  ;;  %5089 = vmatprep.subr.mxu1 %v5802_v1 }
 0x617   : > { %v2225_v4 = vpop.f32.mrf.mxu0  ;;  %v2297_v5 = vpop.f32.mrf.mxu1 }
 0x618   : > { %v2226_v6 = vadd.f32 %v6337_v9, %v2225_v4  ;;  %v2301_v7 = vadd.f32 %v2297_v5, %v2230_v3  ;;  %v5642_v3 = vld [vmem:[%s7085_s4 + $0x8] sm:$0xff]  ;;  %v5643_v5 = vld [vmem:[%s7085_s4] sm:$0xff] }
 0x619   : > { %v5012_v8 = vpop.f32.mrf.mxu0  ;;  %v5031_v10 = vpop.f32.mrf.mxu1 }
 0x61a   : > { %2229 = vst.msk [vmem:[#allocation2 + $0x28] sm:$0xff] %vm564_vm3, %v2226_v6  ;;  %5593 = vtanh.f32 %v2301_v7  ;;  %v2965_v7 = vld [vmem:[#allocation2 + $0x58] sm:$0xff] }
 0x627   : > { %v5594_v11 = vpop.eup %5593 }
 0x628   : > { %5049 = vmatmul.mubr.msk.f32.vlgmr.msra.gmra.mxu0 %vm564_vm3, %v5594_v11  ;;  %5068 = vmatmul.mubr.msk.f32.vlgmr.msra.gmra.mxu1 %vm564_vm3, %v5594_v11 }
 0x629   : > { %5071 = vmatpush3.msra.mxu0 %v6151_v17  ;;  %5090 = vmatpush3.msra.mxu1 %v6156_v18 }
 0x62a   : > { %5072 = vmatprep.subr.mxu0 %v5802_v1  ;;  %5091 = vmatprep.subr.mxu1 %v5802_v1 }
 0x62b   : > { %5073 = vmatpush3.msra.mxu0 %v6165_v19  ;;  %5092 = vmatpush3.msra.mxu1 %v6170_v20 }
 0x62c   : > { %5074 = vmatprep.subr.mxu0 %v5802_v1  ;;  %5093 = vmatprep.subr.mxu1 %v5802_v1 }
 0x62d   : > { %5075 = vmatpush3.msra.mxu0 %v6184_v22  ;;  %5094 = vmatpush3.msra.mxu1 %v6177_v21 }
 0x62e   : > { %5076 = vmatprep.subr.mxu0 %v5802_v1  ;;  %5095 = vmatprep.subr.mxu1 %v5802_v1 }
 0x62f   : > { %5077 = vmatpush3.msra.mxu0 %v6198_v24  ;;  %5096 = vmatpush3.msra.mxu1 %v6191_v23 }
 0x630   : > { %5078 = vmatprep.subr.mxu0 %v5802_v1  ;;  %5097 = vmatprep.subr.mxu1 %v5802_v1 }
 0x631   : > { %5079 = vmatpush3.msra.mxu0 %v6212_v26  ;;  %5098 = vmatpush3.msra.mxu1 %v6205_v25 }
 0x632   : > { %5080 = vmatprep.subr.mxu0 %v5802_v1  ;;  %5099 = vmatprep.subr.mxu1 %v5802_v1 }
 0x633   : > { %5081 = vmatpush3.msra.mxu0 %v6226_v28  ;;  %5100 = vmatpush3.msra.mxu1 %v6219_v27 }
 0x634   : > { %5082 = vmatprep.subr.mxu0 %v5802_v1  ;;  %5101 = vmatprep.subr.mxu1 %v5802_v1 }
 0x635   : > { %5083 = vmatpush3.msra.mxu0 %v6240_v30  ;;  %5102 = vmatpush3.msra.mxu1 %v6233_v29 }
 0x636   : > { %5084 = vmatprep.subr.mxu0 %v5802_v1  ;;  %5103 = vmatprep.subr.mxu1 %v5802_v1 }
 0x637   : > { %5085 = vmatpush3.msra.mxu0 %v6249_v31  ;;  %5086 = vmatprep.mubr.msk.f32.mxu0 %vm5803_vm0, %v5802_v1 }
 0x638   : > { %5104 = vmatpush3.msra.mxu1 %v6254_v32  ;;  %5105 = vmatprep.mubr.msk.f32.mxu1 %vm5803_vm0, %v5802_v1 }
 0x639   : > { %5108 = vmatprep.subr.mxu0 %v5802_v1  ;;  %5127 = vmatprep.subr.mxu1 %v5802_v1 }
 0x6e8   : > { %v2372_v12 = vpop.f32.mrf.mxu0  ;;  %v2444_v14 = vpop.f32.mrf.mxu1 }
 0x6e9   : > { %v2373_v15 = vadd.f32 %v6337_v9, %v2372_v12  ;;  %v2448_v16 = vadd.f32 %v2444_v14, %v2377_v13 }
 0x6ea   : > { %v5050_v33 = vpop.f32.mrf.mxu0  ;;  %v5069_v34 = vpop.f32.mrf.mxu1 }
 0x6eb   : > { %2376 = vst.msk [vmem:[#allocation2 + $0x30] sm:$0xff] %vm564_vm3, %v2373_v15  ;;  %5595 = vtanh.f32 %v2448_v16  ;;  %v3114_v15 = vld [vmem:[#allocation2 + $0x8] sm:$0xff] }
 0x6f8   : > { %v5596_v35 = vpop.eup %5595 }
 0x6f9   : > { %5087 = vmatmul.mubr.msk.f32.vlgmr.msra.gmra.mxu0 %vm564_vm3, %v5596_v35  ;;  %5106 = vmatmul.mubr.msk.f32.vlgmr.msra.gmra.mxu1 %vm564_vm3, %v5596_v35 }
 0x6fa   : > { %5109 = vmatpush3.msra.mxu0 %v6151_v17  ;;  %5128 = vmatpush3.msra.mxu1 %v6156_v18 }
 0x6fb   : > { %5110 = vmatprep.subr.mxu0 %v5802_v1  ;;  %5129 = vmatprep.subr.mxu1 %v5802_v1 }
 0x6fc   : > { %5111 = vmatpush3.msra.mxu0 %v6165_v19  ;;  %5130 = vmatpush3.msra.mxu1 %v6170_v20 }
 0x6fd   : > { %5112 = vmatprep.subr.mxu0 %v5802_v1  ;;  %5131 = vmatprep.subr.mxu1 %v5802_v1 }
 0x6fe   : > { %5113 = vmatpush3.msra.mxu0 %v6184_v22  ;;  %5132 = vmatpush3.msra.mxu1 %v6177_v21 }
 0x6ff   : > { %5114 = vmatprep.subr.mxu0 %v5802_v1  ;;  %5133 = vmatprep.subr.mxu1 %v5802_v1 }
 0x700   : > { %5115 = vmatpush3.msra.mxu0 %v6198_v24  ;;  %5134 = vmatpush3.msra.mxu1 %v6191_v23 }
 0x701   : > { %5116 = vmatprep.subr.mxu0 %v5802_v1  ;;  %5135 = vmatprep.subr.mxu1 %v5802_v1 }
 0x702   : > { %5117 = vmatpush3.msra.mxu0 %v6212_v26  ;;  %5136 = vmatpush3.msra.mxu1 %v6205_v25 }
 0x703   : > { %5118 = vmatprep.subr.mxu0 %v5802_v1  ;;  %5137 = vmatprep.subr.mxu1 %v5802_v1 }
 0x704   : > { %5119 = vmatpush3.msra.mxu0 %v6226_v28  ;;  %5138 = vmatpush3.msra.mxu1 %v6219_v27 }
 0x705   : > { %5120 = vmatprep.subr.mxu0 %v5802_v1  ;;  %5139 = vmatprep.subr.mxu1 %v5802_v1 }
 0x706   : > { %5121 = vmatpush3.msra.mxu0 %v6240_v30  ;;  %5140 = vmatpush3.msra.mxu1 %v6233_v29 }
 0x707   : > { %5122 = vmatprep.subr.mxu0 %v5802_v1  ;;  %5141 = vmatprep.subr.mxu1 %v5802_v1 }
 0x708   : > { %5123 = vmatpush3.msra.mxu0 %v6249_v31  ;;  %5124 = vmatprep.mubr.msk.f32.mxu0 %vm5803_vm0, %v5802_v1 }
 0x709   : > { %5142 = vmatpush3.msra.mxu1 %v6254_v32  ;;  %5143 = vmatprep.mubr.msk.f32.mxu1 %vm5803_vm0, %v5802_v1 }
 0x70a   : > { %5146 = vmatprep.subr.mxu0 %v5802_v1  ;;  %5165 = vmatprep.subr.mxu1 %v5802_v1 }
 0x7b9   : > { %v2519_v37 = vpop.f32.mrf.mxu0  ;;  %v2591_v38 = vpop.f32.mrf.mxu1 }
 0x7ba   : > { %v2520_v39 = vadd.f32 %v6337_v9, %v2519_v37  ;;  %v2595_v40 = vadd.f32 %v2591_v38, %v2524_v36  ;;  %v5644_v36 = vld [vmem:[%s7087_s6] ss:$0 sm:$0xff] }
 0x7bb   : > { %v5088_v41 = vpop.f32.mrf.mxu0  ;;  %v5107_v42 = vpop.f32.mrf.mxu1 }
 0x7bc   : > { %2523 = vst.msk [vmem:[#allocation2 + $0x38] sm:$0xff] %vm564_vm3, %v2520_v39  ;;  %5597 = vtanh.f32 %v2595_v40  ;;  %v3190_v39 = vld [vmem:[#allocation2 + $0x10] sm:$0xff] }
 0x7c9   : > { %v5598_v43 = vpop.eup %5597 }
 0x7ca   : > { %5125 = vmatmul.mubr.msk.f32.vlgmr.msra.gmra.mxu0 %vm564_vm3, %v5598_v43  ;;  %5144 = vmatmul.mubr.msk.f32.vlgmr.msra.gmra.mxu1 %vm564_vm3, %v5598_v43 }
 0x7cb   : > { %5147 = vmatpush3.msra.mxu0 %v6151_v17  ;;  %5166 = vmatpush3.msra.mxu1 %v6156_v18  ;;  %v2671_v18 = vld [vmem:[#allocation2 + $0x48] sm:$0xff] }
 0x7cc   : > { %5148 = vmatprep.subr.mxu0 %v5802_v1  ;;  %5167 = vmatprep.subr.mxu1 %v5802_v1 }
 0x7cd   : > { %5149 = vmatpush3.msra.mxu0 %v6165_v19  ;;  %5168 = vmatpush3.msra.mxu1 %v6170_v20 }
 0x7ce   : > { %5150 = vmatprep.subr.mxu0 %v5802_v1  ;;  %5169 = vmatprep.subr.mxu1 %v5802_v1 }
 0x7cf   : > { %5151 = vmatpush3.msra.mxu0 %v6184_v22  ;;  %5170 = vmatpush3.msra.mxu1 %v6177_v21 }
 0x7d0   : > { %5152 = vmatprep.subr.mxu0 %v5802_v1  ;;  %5171 = vmatprep.subr.mxu1 %v5802_v1 }
 0x7d1   : > { %5153 = vmatpush3.msra.mxu0 %v6198_v24  ;;  %5172 = vmatpush3.msra.mxu1 %v6191_v23 }
 0x7d2   : > { %5154 = vmatprep.subr.mxu0 %v5802_v1  ;;  %5173 = vmatprep.subr.mxu1 %v5802_v1 }
 0x7d3   : > { %5155 = vmatpush3.msra.mxu0 %v6212_v26  ;;  %5174 = vmatpush3.msra.mxu1 %v6205_v25  ;;  %v5629_v25 = vld [vmem:[%s7083_s2 + $0x38] sm:$0xff] }
 0x7d4   : > { %5156 = vmatprep.subr.mxu0 %v5802_v1  ;;  %5175 = vmatprep.subr.mxu1 %v5802_v1  ;;  %v6669_v26 = vld [vmem:[%s7085_s4 + $0x38] sm:$0xff] }
 0x7d5   : > { %5157 = vmatpush3.msra.mxu0 %v6226_v28  ;;  %5176 = vmatpush3.msra.mxu1 %v6219_v27  ;;  %v5631_v27 = vld [vmem:[%s7083_s2 + $0x30] sm:$0xff] }
 0x7d6   : > { %5158 = vmatprep.subr.mxu0 %v5802_v1  ;;  %5177 = vmatprep.subr.mxu1 %v5802_v1  ;;  %v6680_v28 = vld [vmem:[%s7085_s4 + $0x30] sm:$0xff] }
 0x7d7   : > { %5159 = vmatpush3.msra.mxu0 %v6240_v30  ;;  %5178 = vmatpush3.msra.mxu1 %v6233_v29  ;;  %v5633_v29 = vld [vmem:[%s7083_s2 + $0x28] sm:$0xff] }
 0x7d8   : > { %5160 = vmatprep.subr.mxu0 %v5802_v1  ;;  %5179 = vmatprep.subr.mxu1 %v5802_v1 }
 0x7d9   : > { %5161 = vmatpush3.msra.mxu0 %v6249_v31  ;;  %5162 = vmatprep.mubr.msk.f32.mxu0 %vm5803_vm0, %v5802_v1 }
 0x7da   : > { %5180 = vmatpush3.msra.mxu1 %v6254_v32  ;;  %5181 = vmatprep.mubr.msk.f32.mxu1 %vm5803_vm0, %v5802_v1 }
 0x7db   : > { %5203 = vmatprep.subr.mxu1 %v5802_v1  ;;  %5184 = vmatprep.subr.mxu0 %v5802_v1 }
 0x88a   : > { %v2666_v17 = vpop.f32.mrf.mxu0  ;;  %v2738_v19 = vpop.f32.mrf.mxu1 }
 0x88b   : > { %v2667_v20 = vadd.f32 %v6337_v9, %v2666_v17  ;;  %v2742_v21 = vadd.f32 %v2738_v19, %v2671_v18  ;;  %v3266_v17 = vld [vmem:[#allocation2 + $0x18] sm:$0xff] }
 0x88c   : > { %v5126_v22 = vpop.f32.mrf.mxu0  ;;  %v5145_v23 = vpop.f32.mrf.mxu1 }
 0x88d   : > { %2670 = vst.msk [vmem:[#allocation2 + $0x40] sm:$0xff] %vm564_vm3, %v2667_v20  ;;  %5599 = vtanh.f32 %v2742_v21  ;;  %v3342_v22 = vld [vmem:[#allocation2 + $0x20] sm:$0xff] }
 0x89a   : > { %v5600_v24 = vpop.eup %5599 }
 0x89b   : > { %5163 = vmatmul.mubr.msk.f32.vlgmr.msra.gmra.mxu0 %vm564_vm3, %v5600_v24  ;;  %5182 = vmatmul.mubr.msk.f32.vlgmr.msra.gmra.mxu1 %vm564_vm3, %v5600_v24 }
 0x89c   : > { %5204 = vmatpush3.msra.mxu1 %v5629_v25  ;;  %5185 = vmatpush3.msra.mxu0 %v6669_v26 }
 0x89d   : > { %5205 = vmatprep.subr.mxu1 %v5802_v1  ;;  %5186 = vmatprep.subr.mxu0 %v5802_v1 }
 0x89e   : > { %5206 = vmatpush3.msra.mxu1 %v5631_v27  ;;  %5187 = vmatpush3.msra.mxu0 %v6680_v28  ;;  %v3418_v27 = vld [vmem:[#allocation2 + $0x28] sm:$0xff] }
 0x89f   : > { %5207 = vmatprep.subr.mxu1 %v5802_v1  ;;  %5188 = vmatprep.subr.mxu0 %v5802_v1 }
 0x8a0   : > { %5208 = vmatpush3.msra.mxu1 %v5633_v29  ;;  %5189 = vmatpush3.msra.mxu0 %v5634_v44 }
 0x8a1   : > { %5209 = vmatprep.subr.mxu1 %v5802_v1  ;;  %5190 = vmatprep.subr.mxu0 %v5802_v1 }
 0x8a2   : > { %5210 = vmatpush3.msra.mxu1 %v5635_v45  ;;  %5191 = vmatpush3.msra.mxu0 %v5636_v46 }
 0x8a3   : > { %5211 = vmatprep.subr.mxu1 %v5802_v1  ;;  %5192 = vmatprep.subr.mxu0 %v5802_v1 }
 0x8a4   : > { %5212 = vmatpush3.msra.mxu1 %v5637_v47  ;;  %5193 = vmatpush3.msra.mxu0 %v5638_v48 }
 0x8a5   : > { %5213 = vmatprep.subr.mxu1 %v5802_v1  ;;  %5194 = vmatprep.subr.mxu0 %v5802_v1 }
 0x8a6   : > { %5214 = vmatpush3.msra.mxu1 %v5639_v49  ;;  %5195 = vmatpush3.msra.mxu0 %v5640_v50 }
 0x8a7   : > { %5215 = vmatprep.subr.mxu1 %v5802_v1  ;;  %5196 = vmatprep.subr.mxu0 %v5802_v1 }
 0x8a8   : > { %5216 = vmatpush3.msra.mxu1 %v5641_v51  ;;  %5197 = vmatpush3.msra.mxu0 %v6240_v30  ;;  %v3570_v51 = vld [vmem:[#allocation2 + $0x38] sm:$0xff] }
 0x8a9   : > { %5217 = vmatprep.subr.mxu1 %v5802_v1  ;;  %5198 = vmatprep.subr.mxu0 %v5802_v1 }
 0x8aa   : > { %5218 = vmatpush3.msra.mxu1 %v6254_v32  ;;  %5199 = vmatpush3.msra.mxu0 %v6249_v31  ;;  %v6733_v31 = vld [vmem:[#allocation8 + $0x38] sm:$0xff] }
 0x8ab   : > { %5200 = vmatprep.mubr.msk.f32.mxu0 %vm5803_vm0, %v5802_v1  ;;  %5219 = vmatprep.mubr.msk.f32.mxu1 %vm5803_vm0, %v5802_v1 }
 0x8ac   : > { %5241 = vmatprep.subr.mxu1 %v5802_v1  ;;  %5222 = vmatprep.subr.mxu0 %v5802_v1 }
 0x95b   : > { %v2813_v30 = vpop.f32.mrf.mxu0  ;;  %v2885_v53 = vpop.f32.mrf.mxu1 }
 0x95c   : > { %v2814_v54 = vadd.f32 %v6337_v9, %v2813_v30  ;;  %v2889_v55 = vadd.f32 %v2885_v53, %v2818_v52 }
 0x95d   : > { %v5164_v56 = vpop.f32.mrf.mxu0  ;;  %v5183_v32 = vpop.f32.mrf.mxu1 }
 0x95e   : > { %2817 = vst.msk [vmem:[#allocation2 + $0x48] sm:$0xff] %vm564_vm3, %v2814_v54  ;;  %5601 = vtanh.f32 %v2889_v55  ;;  %v3646_v55 = vld [vmem:[#allocation2 + $0x40] sm:$0xff] }
 0x95f   : > { %5603 = vtanh.f32 %v3112_v58 }
 0x96b   : > { %v5602_v57 = vpop.eup %5601 }
 0x96c   : > { %5201 = vmatmul.mubr.msk.f32.vlgmr.msra.gmra.mxu0 %vm564_vm3, %v5602_v57  ;;  %5220 = vmatmul.mubr.msk.f32.vlgmr.msra.gmra.mxu1 %vm564_vm3, %v5602_v57  ;;  %v5604_v4 = vpop.eup %5603 }
 0x96d   : > { %5242 = vmatpush3.msra.mxu1 %v6733_v31  ;;  %5257 = vmatprep.mubr.msk.f32.mxu1 %vm5803_vm0, %v5802_v1 }
 0x96e   : > { %5243 = vmatprep.subr.mxu1 %v5802_v1  ;;  %5223 = vmatpush3.msra.mxu0 %v6669_v26 }
 0x96f   : > { %5244 = vmatpush3.msra.mxu1 %v6737_v59  ;;  %5224 = vmatprep.subr.mxu0 %v5802_v1 }
 0x970   : > { %5245 = vmatprep.subr.mxu1 %v5802_v1  ;;  %5225 = vmatpush3.msra.mxu0 %v6680_v28 }
 0x971   : > { %5246 = vmatpush3.msra.mxu1 %v6743_v60  ;;  %5226 = vmatprep.subr.mxu0 %v5802_v1 }
 0x972   : > { %5247 = vmatprep.subr.mxu1 %v5802_v1  ;;  %5227 = vmatpush3.msra.mxu0 %v5634_v44 }
 0x973   : > { %5248 = vmatpush3.msra.mxu1 %v6749_v61  ;;  %5228 = vmatprep.subr.mxu0 %v5802_v1 }
 0x974   : > { %5249 = vmatprep.subr.mxu1 %v5802_v1  ;;  %5229 = vmatpush3.msra.mxu0 %v5636_v46  ;;  %v3494_v46 = vld [vmem:[#allocation2 + $0x30] sm:$0xff] }
 0x975   : > { %5250 = vmatpush3.msra.mxu1 %v6755_v62  ;;  %5230 = vmatprep.subr.mxu0 %v5802_v1 }
 0x976   : > { %5251 = vmatprep.subr.mxu1 %v5802_v1  ;;  %5231 = vmatpush3.msra.mxu0 %v5638_v48 }
 0x977   : > { %5252 = vmatpush3.msra.mxu1 %v6760_v63  ;;  %5232 = vmatprep.subr.mxu0 %v5802_v1 }
 0x978   : > { %5253 = vmatprep.subr.mxu1 %v5802_v1  ;;  %5233 = vmatpush3.msra.mxu0 %v5640_v50 }
 0x979   : > { %5254 = vmatpush3.msra.mxu1 %v6765_v0  ;;  %5234 = vmatprep.subr.mxu0 %v5802_v1 }
 0x97a   : > { %5255 = vmatprep.subr.mxu1 %v5802_v1  ;;  %5235 = vmatpush3.msra.mxu0 %v5642_v3 }
 0x97b   : > { %5256 = vmatpush3.msra.mxu1 %v6770_v2  ;;  %5236 = vmatprep.subr.mxu0 %v5802_v1 }
 0x97c   : > { %5258 = vmatmul.mubr.msk.f32.vlgmr.msra.gmra.mxu1 %vm564_vm3, %v5604_v4  ;;  %5237 = vmatpush3.msra.mxu0 %v5643_v5 }
 0x97d   : > { %5238 = vmatprep.mubr.msk.f32.mxu0 %vm5803_vm0, %v5802_v1  ;;  %5260 = vmatprep.subr.mxu0 %v5802_v1 }
 0x97e   : > { %5279 = vmatprep.subr.mxu1 %v5802_v1  ;;  %5295 = vmatprep.mubr.msk.f32.mxu1 %vm5803_vm0, %v5802_v1 }
 0x97f   : > { %5280 = vmatpush3.msra.mxu1 %v6733_v31 }
 0x980   : > { %5281 = vmatprep.subr.mxu1 %v5802_v1 }
 0x981   : > { %5282 = vmatpush3.msra.mxu1 %v6737_v59 }
 0x982   : > { %5283 = vmatprep.subr.mxu1 %v5802_v1 }
 0x983   : > { %5284 = vmatpush3.msra.mxu1 %v6743_v60 }
 0x984   : > { %5285 = vmatprep.subr.mxu1 %v5802_v1 }
 0x985   : > { %5286 = vmatpush3.msra.mxu1 %v6749_v61 }
 0x986   : > { %5287 = vmatprep.subr.mxu1 %v5802_v1 }
 0x987   : > { %5288 = vmatpush3.msra.mxu1 %v6755_v62 }
 0x988   : > { %5289 = vmatprep.subr.mxu1 %v5802_v1 }
 0x989   : > { %5290 = vmatpush3.msra.mxu1 %v6760_v63 }
 0x98a   : > { %5291 = vmatprep.subr.mxu1 %v5802_v1 }
 0x98b   : > { %5292 = vmatpush3.msra.mxu1 %v6765_v0 }
 0x98c   : > { %5293 = vmatprep.subr.mxu1 %v5802_v1 }
 0x98d   : > { %5294 = vmatpush3.msra.mxu1 %v6770_v2 }
 0x98e   : > { %5317 = vmatprep.subr.mxu1 %v5802_v1 }
 0xa2c   : > { %v2960_v6 = vpop.f32.mrf.mxu0  ;;  %v3032_v8 = vpop.f32.mrf.mxu1 }
 0xa2d   : > { %v2961_v10 = vadd.f32 %v6337_v9, %v2960_v6  ;;  %v3036_v11 = vadd.f32 %v3032_v8, %v2965_v7  ;;  %v3956_v6 = vld [vmem:[#allocation9 + $0x30] sm:$0xff]  ;;  %v3955_v7 = vld [vmem:[#allocation9 + $0x28] sm:$0xff]  ;;  %v3954_v8 = vld [vmem:[#allocation9 + $0x20] sm:$0xff] }
 0xa2e   : > { %v5202_v12 = vpop.f32.mrf.mxu0  ;;  %v5221_v13 = vpop.f32.mrf.mxu1 }
 0xa2f   : > { %2964 = vst.msk [vmem:[#allocation2 + $0x50] sm:$0xff] %vm564_vm3, %v2961_v10  ;;  %5605 = vtanh.f32 %v3036_v11  ;;  %v3953_v10 = vld [vmem:[#allocation9 + $0x18] sm:$0xff]  ;;  %v3952_v11 = vld [vmem:[#allocation9 + $0x10] sm:$0xff]  ;;  %v3951_v12 = vld [vmem:[#allocation9 + $0x8] sm:$0xff] }
 0xa30   : > { %v3950_v13 = vld [vmem:[#allocation9] sm:$0xff] }
 0xa3c   : > { %v5606_v14 = vpop.eup %5605  ;;  %v3184_v16 = vpop.f32.mrf.mxu1 }
 0xa3d   : > { %v3188_v33 = vadd.f32 %v3184_v16, %v3114_v15  ;;  %5239 = vmatmul.mubr.msk.f32.vlgmr.msra.gmra.mxu0 %vm564_vm3, %v5606_v14  ;;  %v4054_v14 = vld [vmem:[%s7090_s9 + $0x78] sm:$0xff]  ;;  %v4053_v15 = vld [vmem:[%s7090_s9 + $0x70] sm:$0xff]  ;;  %v4052_v16 = vld [vmem:[%s7090_s9 + $0x68] sm:$0xff] }
 0xa3e   : > { %v5259_v34 = vpop.f32.mrf.mxu1  ;;  %5261 = vmatpush3.msra.mxu0 %v6733_v31  ;;  %5276 = vmatprep.mubr.msk.f32.mxu0 %vm5803_vm0, %v5802_v1 }
 0xa3f   : > { %5607 = vtanh.f32 %v3188_v33  ;;  %5262 = vmatprep.subr.mxu0 %v5802_v1  ;;  %v4051_v33 = vld [vmem:[%s7090_s9 + $0x60] sm:$0xff]  ;;  %v4050_v34 = vld [vmem:[%s7090_s9 + $0x58] sm:$0xff] }
 0xa40   : > { %5263 = vmatpush3.msra.mxu0 %v6737_v59 }
 0xa41   : > { %5264 = vmatprep.subr.mxu0 %v5802_v1 }
 0xa42   : > { %5265 = vmatpush3.msra.mxu0 %v6743_v60 }
 0xa43   : > { %5266 = vmatprep.subr.mxu0 %v5802_v1 }
 0xa44   : > { %5267 = vmatpush3.msra.mxu0 %v6749_v61 }
 0xa45   : > { %5268 = vmatprep.subr.mxu0 %v5802_v1 }
 0xa46   : > { %5269 = vmatpush3.msra.mxu0 %v6755_v62 }
 0xa47   : > { %5270 = vmatprep.subr.mxu0 %v5802_v1 }
 0xa48   : > { %5271 = vmatpush3.msra.mxu0 %v6760_v63 }
 0xa49   : > { %5272 = vmatprep.subr.mxu0 %v5802_v1 }
 0xa4a   : > { %5273 = vmatpush3.msra.mxu0 %v6765_v0 }
 0xa4b   : > { %5274 = vmatprep.subr.mxu0 %v5802_v1 }
 0xa4c   : > { %v5608_v9 = vpop.eup %5607  ;;  %5275 = vmatpush3.msra.mxu0 %v6770_v2 }
 0xa4d   : > { %5277 = vmatmul.mubr.msk.f32.vlgmr.msra.gmra.mxu0 %vm564_vm3, %v5608_v9  ;;  %5298 = vmatprep.subr.mxu0 %v5802_v1  ;;  %v4049_v9 = vld [vmem:[%s7090_s9 + $0x50] sm:$0xff] }
 0xa4e   : > { %5299 = vmatpush3.msra.mxu0 %v6733_v31  ;;  %5314 = vmatprep.mubr.msk.f32.mxu0 %vm5803_vm0, %v5802_v1 }
 0xa4f   : > { %5300 = vmatprep.subr.mxu0 %v5802_v1 }
 0xa50   : > { %5301 = vmatpush3.msra.mxu0 %v6737_v59 }
 0xa51   : > { %5302 = vmatprep.subr.mxu0 %v5802_v1 }
 0xa52   : > { %5303 = vmatpush3.msra.mxu0 %v6743_v60 }
 0xa53   : > { %5304 = vmatprep.subr.mxu0 %v5802_v1 }
 0xa54   : > { %5305 = vmatpush3.msra.mxu0 %v6749_v61 }
 0xa55   : > { %5306 = vmatprep.subr.mxu0 %v5802_v1 }
 0xa56   : > { %5307 = vmatpush3.msra.mxu0 %v6755_v62 }
 0xa57   : > { %5308 = vmatprep.subr.mxu0 %v5802_v1 }
 0xa58   : > { %5309 = vmatpush3.msra.mxu0 %v6760_v63 }
 0xa59   : > { %5310 = vmatprep.subr.mxu0 %v5802_v1 }
 0xa5a   : > { %5311 = vmatpush3.msra.mxu0 %v6765_v0 }
 0xa5b   : > { %5312 = vmatprep.subr.mxu0 %v5802_v1 }
 0xa5c   : > { %5313 = vmatpush3.msra.mxu0 %v6770_v2 }
 0xa5d   : > { %5336 = vmatprep.subr.mxu0 %v5802_v1 }
 0xafd   : > { %v3107_v35 = vpop.f32.mrf.mxu0 }
 0xafe   : > { %v3108_v37 = vadd.f32 %v5644_v36, %v3107_v35  ;;  %v4048_v35 = vld [vmem:[%s7090_s9 + $0x48] sm:$0xff]  ;;  %v4047_v36 = vld [vmem:[%s7090_s9 + $0x40] sm:$0xff] }
 0xaff   : > { %v5240_v38 = vpop.f32.mrf.mxu0 }
 0xb00   : > { %3111 = vst.msk [vmem:[#allocation2 + $0x58] sm:$0xff] %vm564_vm3, %v3108_v37  ;;  %v4046_v37 = vld [vmem:[%s7090_s9 + $0x38] sm:$0xff]  ;;  %v4045_v38 = vld [vmem:[%s7090_s9 + $0x30] sm:$0xff] }
 0xb0d   : > { %v3260_v40 = vpop.f32.mrf.mxu0 }
 0xb0e   : > { %v3264_v41 = vadd.f32 %v3260_v40, %v3190_v39  ;;  %v4044_v39 = vld [vmem:[%s7090_s9 + $0x28] sm:$0xff]  ;;  %v4043_v40 = vld [vmem:[%s7090_s9 + $0x20] sm:$0xff] }
 0xb0f   : > { %v5278_v42 = vpop.f32.mrf.mxu0 }
 0xb10   : > { %5609 = vtanh.f32 %v3264_v41  ;;  %v4042_v41 = vld [vmem:[%s7090_s9 + $0x18] sm:$0xff] }
 0xb11   : > { %v3874_v42 = vld [vmem:[#allocation2 + $0x58] sm:$0xff] }
 0xb1d   : > { %v5610_v43 = vpop.eup %5609 }
 0xb1e   : > { %5296 = vmatmul.mubr.msk.f32.vlgmr.msra.gmra.mxu1 %vm564_vm3, %v5610_v43 }
 0xb1f   : > { %5318 = vmatpush3.msra.mxu1 %v6733_v31  ;;  %5333 = vmatprep.mubr.msk.f32.mxu1 %vm5803_vm0, %v5802_v1 }
 0xb20   : > { %5319 = vmatprep.subr.mxu1 %v5802_v1 }
 0xb21   : > { %5320 = vmatpush3.msra.mxu1 %v6737_v59 }
 0xb22   : > { %5321 = vmatprep.subr.mxu1 %v5802_v1 }
 0xb23   : > { %5322 = vmatpush3.msra.mxu1 %v6743_v60 }
 0xb24   : > { %5323 = vmatprep.subr.mxu1 %v5802_v1 }
 0xb25   : > { %5324 = vmatpush3.msra.mxu1 %v6749_v61 }
 0xb26   : > { %5325 = vmatprep.subr.mxu1 %v5802_v1 }
 0xb27   : > { %5326 = vmatpush3.msra.mxu1 %v6755_v62 }
 0xb28   : > { %5327 = vmatprep.subr.mxu1 %v5802_v1 }
 0xb29   : > { %5328 = vmatpush3.msra.mxu1 %v6760_v63 }
 0xb2a   : > { %5329 = vmatprep.subr.mxu1 %v5802_v1 }
 0xb2b   : > { %5330 = vmatpush3.msra.mxu1 %v6765_v0 }
 0xb2c   : > { %5331 = vmatprep.subr.mxu1 %v5802_v1 }
 0xb2d   : > { %5332 = vmatpush3.msra.mxu1 %v6770_v2 }
 0xb2e   : > { %5355 = vmatprep.subr.mxu1 %v5802_v1 }
 0xbde   : > { %v3336_v18 = vpop.f32.mrf.mxu1 }
 0xbdf   : > { %v3340_v19 = vadd.f32 %v3336_v18, %v3266_v17 }
 0xbe0   : > { %v5297_v20 = vpop.f32.mrf.mxu1 }
 0xbe1   : > { %5611 = vtanh.f32 %v3340_v19  ;;  %v4041_v20 = vld [vmem:[%s7090_s9 + $0x10] sm:$0xff] }
 0xbee   : > { %v5612_v21 = vpop.eup %5611 }
 0xbef   : > { %5315 = vmatmul.mubr.msk.f32.vlgmr.msra.gmra.mxu0 %vm564_vm3, %v5612_v21  ;;  %v4040_v21 = vld [vmem:[%s7090_s9 + $0x8] sm:$0xff] }
 0xbf0   : > { %5337 = vmatpush3.msra.mxu0 %v6733_v31  ;;  %5352 = vmatprep.mubr.msk.f32.mxu0 %vm5803_vm0, %v5802_v1 }
 0xbf1   : > { %5338 = vmatprep.subr.mxu0 %v5802_v1 }
 0xbf2   : > { %5339 = vmatpush3.msra.mxu0 %v6737_v59 }
 0xbf3   : > { %5340 = vmatprep.subr.mxu0 %v5802_v1 }
 0xbf4   : > { %5341 = vmatpush3.msra.mxu0 %v6743_v60 }
 0xbf5   : > { %5342 = vmatprep.subr.mxu0 %v5802_v1 }
 0xbf6   : > { %5343 = vmatpush3.msra.mxu0 %v6749_v61 }
 0xbf7   : > { %5344 = vmatprep.subr.mxu0 %v5802_v1 }
 0xbf8   : > { %5345 = vmatpush3.msra.mxu0 %v6755_v62 }
 0xbf9   : > { %5346 = vmatprep.subr.mxu0 %v5802_v1 }
 0xbfa   : > { %5347 = vmatpush3.msra.mxu0 %v6760_v63 }
 0xbfb   : > { %5348 = vmatprep.subr.mxu0 %v5802_v1 }
 0xbfc   : > { %5349 = vmatpush3.msra.mxu0 %v6765_v0 }
 0xbfd   : > { %5350 = vmatprep.subr.mxu0 %v5802_v1 }
 0xbfe   : > { %5351 = vmatpush3.msra.mxu0 %v6770_v2 }
 0xbff   : > { %5374 = vmatprep.subr.mxu0 %v5802_v1 }
 0xcaf   : > { %v3412_v23 = vpop.f32.mrf.mxu0 }
 0xcb0   : > { %v3416_v24 = vadd.f32 %v3412_v23, %v3342_v22  ;;  %v4039_v22 = vld [vmem:[%s7090_s9] sm:$0xff] }
 0xcb1   : > { %v5316_v25 = vpop.f32.mrf.mxu0  ;;  %v4311_v23 = vld [vmem:[%s7089_s8] ss:$0 sm:$0xff] }
 0xcb2   : > { %5613 = vtanh.f32 %v3416_v24 }
 0xcbf   : > { %v5614_v26 = vpop.eup %5613 }
 0xcc0   : > { %5334 = vmatmul.mubr.msk.f32.vlgmr.msra.gmra.mxu1 %vm564_vm3, %v5614_v26 }
 0xcc1   : > { %5356 = vmatpush3.msra.mxu1 %v6733_v31  ;;  %5371 = vmatprep.mubr.msk.f32.mxu1 %vm5803_vm0, %v5802_v1 }
 0xcc2   : > { %5357 = vmatprep.subr.mxu1 %v5802_v1 }
 0xcc3   : > { %5358 = vmatpush3.msra.mxu1 %v6737_v59 }
 0xcc4   : > { %5359 = vmatprep.subr.mxu1 %v5802_v1 }
 0xcc5   : > { %5360 = vmatpush3.msra.mxu1 %v6743_v60 }
 0xcc6   : > { %5361 = vmatprep.subr.mxu1 %v5802_v1 }
 0xcc7   : > { %5362 = vmatpush3.msra.mxu1 %v6749_v61 }
 0xcc8   : > { %5363 = vmatprep.subr.mxu1 %v5802_v1 }
 0xcc9   : > { %5364 = vmatpush3.msra.mxu1 %v6755_v62 }
 0xcca   : > { %5365 = vmatprep.subr.mxu1 %v5802_v1 }
 0xccb   : > { %5366 = vmatpush3.msra.mxu1 %v6760_v63 }
 0xccc   : > { %5367 = vmatprep.subr.mxu1 %v5802_v1 }
 0xccd   : > { %5368 = vmatpush3.msra.mxu1 %v6765_v0 }
 0xcce   : > { %5369 = vmatprep.subr.mxu1 %v5802_v1 }
 0xccf   : > { %5370 = vmatpush3.msra.mxu1 %v6770_v2 }
 0xcd0   : > { %5393 = vmatprep.subr.mxu1 %v5802_v1 }
 0xd80   : > { %v3488_v28 = vpop.f32.mrf.mxu1 }
 0xd81   : > { %v3492_v29 = vadd.f32 %v3488_v28, %v3418_v27  ;;  %v4313_v28 = vld [vmem:[#allocation3] ss:$0 sm:$0xff] }
 0xd82   : > { %v5335_v44 = vpop.f32.mrf.mxu1 }
 0xd83   : > { %5615 = vtanh.f32 %v3492_v29 }
 0xd90   : > { %v5616_v45 = vpop.eup %5615 }
 0xd91   : > { %5353 = vmatmul.mubr.msk.f32.vlgmr.msra.gmra.mxu0 %vm564_vm3, %v5616_v45 }
 0xd92   : > { %5375 = vmatpush3.msra.mxu0 %v6733_v31  ;;  %5390 = vmatprep.mubr.msk.f32.mxu0 %vm5803_vm0, %v5802_v1 }
 0xd93   : > { %5376 = vmatprep.subr.mxu0 %v5802_v1 }
 0xd94   : > { %5377 = vmatpush3.msra.mxu0 %v6737_v59 }
 0xd95   : > { %5378 = vmatprep.subr.mxu0 %v5802_v1 }
 0xd96   : > { %5379 = vmatpush3.msra.mxu0 %v6743_v60 }
 0xd97   : > { %5380 = vmatprep.subr.mxu0 %v5802_v1 }
 0xd98   : > { %5381 = vmatpush3.msra.mxu0 %v6749_v61 }
 0xd99   : > { %5382 = vmatprep.subr.mxu0 %v5802_v1 }
 0xd9a   : > { %5383 = vmatpush3.msra.mxu0 %v6755_v62 }
 0xd9b   : > { %5384 = vmatprep.subr.mxu0 %v5802_v1 }
 0xd9c   : > { %5385 = vmatpush3.msra.mxu0 %v6760_v63 }
 0xd9d   : > { %5386 = vmatprep.subr.mxu0 %v5802_v1 }
 0xd9e   : > { %5387 = vmatpush3.msra.mxu0 %v6765_v0 }
 0xd9f   : > { %5388 = vmatprep.subr.mxu0 %v5802_v1 }
 0xda0   : > { %5389 = vmatpush3.msra.mxu0 %v6770_v2 }
 0xda1   : > { %5412 = vmatprep.subr.mxu0 %v5802_v1 }
 0xe51   : > { %v3564_v47 = vpop.f32.mrf.mxu0 }
 0xe52   : > { %v3568_v48 = vadd.f32 %v3564_v47, %v3494_v46 }
 0xe53   : > { %v5354_v49 = vpop.f32.mrf.mxu0 }
 0xe54   : > { %5617 = vtanh.f32 %v3568_v48 }
 0xe61   : > { %v5618_v50 = vpop.eup %5617 }
 0xe62   : > { %5372 = vmatmul.mubr.msk.f32.vlgmr.msra.gmra.mxu1 %vm564_vm3, %v5618_v50 }
 0xe63   : > { %5394 = vmatpush3.msra.mxu1 %v6733_v31  ;;  %5409 = vmatprep.mubr.msk.f32.mxu1 %vm5803_vm0, %v5802_v1 }
 0xe64   : > { %5395 = vmatprep.subr.mxu1 %v5802_v1 }
 0xe65   : > { %5396 = vmatpush3.msra.mxu1 %v6737_v59 }
 0xe66   : > { %5397 = vmatprep.subr.mxu1 %v5802_v1 }
 0xe67   : > { %5398 = vmatpush3.msra.mxu1 %v6743_v60 }
 0xe68   : > { %5399 = vmatprep.subr.mxu1 %v5802_v1 }
 0xe69   : > { %5400 = vmatpush3.msra.mxu1 %v6749_v61 }
 0xe6a   : > { %5401 = vmatprep.subr.mxu1 %v5802_v1 }
 0xe6b   : > { %5402 = vmatpush3.msra.mxu1 %v6755_v62 }
 0xe6c   : > { %5403 = vmatprep.subr.mxu1 %v5802_v1 }
 0xe6d   : > { %5404 = vmatpush3.msra.mxu1 %v6760_v63 }
 0xe6e   : > { %5405 = vmatprep.subr.mxu1 %v5802_v1 }
 0xe6f   : > { %5406 = vmatpush3.msra.mxu1 %v6765_v0 }
 0xe70   : > { %5407 = vmatprep.subr.mxu1 %v5802_v1 }
 0xe71   : > { %5408 = vmatpush3.msra.mxu1 %v6770_v2 }
 0xe72   : > { %5431 = vmatprep.subr.mxu1 %v5802_v1 }
 0xf22   : > { %v3640_v52 = vpop.f32.mrf.mxu1 }
 0xf23   : > { %v3644_v30 = vadd.f32 %v3640_v52, %v3570_v51 }
 0xf24   : > { %v5373_v53 = vpop.f32.mrf.mxu1 }
 0xf25   : > { %5619 = vtanh.f32 %v3644_v30 }
 0xf32   : > { %v5620_v54 = vpop.eup %5619 }
 0xf33   : > { %5391 = vmatmul.mubr.msk.f32.vlgmr.msra.gmra.mxu0 %vm564_vm3, %v5620_v54 }
 0xf34   : > { %5413 = vmatpush3.msra.mxu0 %v6733_v31  ;;  %5428 = vmatprep.mubr.msk.f32.mxu0 %vm5803_vm0, %v5802_v1 }
 0xf35   : > { %5414 = vmatprep.subr.mxu0 %v5802_v1 }
 0xf36   : > { %5415 = vmatpush3.msra.mxu0 %v6737_v59 }
 0xf37   : > { %5416 = vmatprep.subr.mxu0 %v5802_v1 }
 0xf38   : > { %5417 = vmatpush3.msra.mxu0 %v6743_v60 }
 0xf39   : > { %5418 = vmatprep.subr.mxu0 %v5802_v1 }
 0xf3a   : > { %5419 = vmatpush3.msra.mxu0 %v6749_v61 }
 0xf3b   : > { %5420 = vmatprep.subr.mxu0 %v5802_v1 }
 0xf3c   : > { %5421 = vmatpush3.msra.mxu0 %v6755_v62 }
 0xf3d   : > { %5422 = vmatprep.subr.mxu0 %v5802_v1 }
 0xf3e   : > { %5423 = vmatpush3.msra.mxu0 %v6760_v63 }
 0xf3f   : > { %5424 = vmatprep.subr.mxu0 %v5802_v1 }
 0xf40   : > { %5425 = vmatpush3.msra.mxu0 %v6765_v0 }
 0xf41   : > { %5426 = vmatprep.subr.mxu0 %v5802_v1 }
 0xf42   : > { %5427 = vmatpush3.msra.mxu0 %v6770_v2 }
 0xf43   : > { %5450 = vmatprep.subr.mxu0 %v5802_v1 }
 0xff3   : > { %v3716_v56 = vpop.f32.mrf.mxu0 }
 0xff4   : > { %v3720_v32 = vadd.f32 %v3716_v56, %v3646_v55 }
 0xff5   : > { %v5392_v57 = vpop.f32.mrf.mxu0 }
 0xff6   : > { %5621 = vtanh.f32 %v3720_v32 }
0x1003   : > { %v5622_v58 = vpop.eup %5621 }
0x1004   : > { %5410 = vmatmul.mubr.msk.f32.vlgmr.msra.gmra.mxu1 %vm564_vm3, %v5622_v58 }
0x1005   : > { %5432 = vmatpush3.msra.mxu1 %v6733_v31  ;;  %5447 = vmatprep.mubr.msk.f32.mxu1 %vm5803_vm0, %v5802_v1  ;;  %v3722_v31 = vld [vmem:[#allocation2 + $0x48] sm:$0xff] }
0x1006   : > { %5433 = vmatprep.subr.mxu1 %v5802_v1 }
0x1007   : > { %5434 = vmatpush3.msra.mxu1 %v6737_v59 }
0x1008   : > { %5435 = vmatprep.subr.mxu1 %v5802_v1 }
0x1009   : > { %5436 = vmatpush3.msra.mxu1 %v6743_v60 }
0x100a   : > { %5437 = vmatprep.subr.mxu1 %v5802_v1 }
0x100b   : > { %5438 = vmatpush3.msra.mxu1 %v6749_v61 }
0x100c   : > { %5439 = vmatprep.subr.mxu1 %v5802_v1 }
0x100d   : > { %5440 = vmatpush3.msra.mxu1 %v6755_v62 }
0x100e   : > { %5441 = vmatprep.subr.mxu1 %v5802_v1 }
0x100f   : > { %5442 = vmatpush3.msra.mxu1 %v6760_v63  ;;  %v3798_v63 = vld [vmem:[#allocation2 + $0x50] sm:$0xff] }
0x1010   : > { %5443 = vmatprep.subr.mxu1 %v5802_v1 }
0x1011   : > { %5444 = vmatpush3.msra.mxu1 %v6765_v0 }
0x1012   : > { %5445 = vmatprep.subr.mxu1 %v5802_v1 }
0x1013   : > { %5446 = vmatpush3.msra.mxu1 %v6770_v2  ;;  %v3957_v2 = vld [vmem:[#allocation9 + $0x38] sm:$0xff] }
0x1014   : > { %5469 = vmatprep.subr.mxu1 %v5802_v1 }
0x10c4   : > { %v3792_v59 = vpop.f32.mrf.mxu1 }
0x10c5   : > { %v3796_v60 = vadd.f32 %v3792_v59, %v3722_v31 }
0x10c6   : > { %v5411_v61 = vpop.f32.mrf.mxu1 }
0x10c7   : > { %5623 = vtanh.f32 %v3796_v60 }
0x10d4   : > { %v5624_v62 = vpop.eup %5623 }
0x10d5   : > { %5429 = vmatmul.mubr.msk.f32.vlgmr.msra.gmra.mxu0 %vm564_vm3, %v5624_v62 }
0x10d6   : > { %5466 = vmatprep.mubr.msk.f32.mxu0 %vm5803_vm0, %v5802_v1  ;;  %5451 = vmatpush3.msra.mxu0 %v3957_v2 }
0x10d7   : > { %5452 = vmatprep.subr.mxu0 %v5802_v1 }
0x10d8   : > { %5453 = vmatpush3.msra.mxu0 %v3956_v6 }
0x10d9   : > { %5454 = vmatprep.subr.mxu0 %v5802_v1 }
0x10da   : > { %5455 = vmatpush3.msra.mxu0 %v3955_v7 }
0x10db   : > { %5456 = vmatprep.subr.mxu0 %v5802_v1 }
0x10dc   : > { %5457 = vmatpush3.msra.mxu0 %v3954_v8 }
0x10dd   : > { %5458 = vmatprep.subr.mxu0 %v5802_v1 }
0x10de   : > { %5459 = vmatpush3.msra.mxu0 %v3953_v10 }
0x10df   : > { %5460 = vmatprep.subr.mxu0 %v5802_v1 }
0x10e0   : > { %5461 = vmatpush3.msra.mxu0 %v3952_v11 }
0x10e1   : > { %5462 = vmatprep.subr.mxu0 %v5802_v1 }
0x10e2   : > { %5463 = vmatpush3.msra.mxu0 %v3951_v12 }
0x10e3   : > { %5464 = vmatprep.subr.mxu0 %v5802_v1 }
0x10e4   : > { %5465 = vmatpush3.msra.mxu0 %v3950_v13 }
0x1195   : > { %v3868_v3 = vpop.f32.mrf.mxu0 }
0x1196   : > { %v3872_v0 = vadd.f32 %v3868_v3, %v3798_v63 }
0x1197   : > { %v5430_v4 = vpop.f32.mrf.mxu0 }
0x1198   : > { %5625 = vtanh.f32 %v3872_v0 }
0x11a5   : > { %v5626_v5 = vpop.eup %5625 }
0x11a6   : > { %5448 = vmatmul.mubr.msk.f32.vlgmr.msra.gmra.mxu1 %vm564_vm3, %v5626_v5 }
0x11a7   : > { %5501 = vmatprep.mubr.msk.f32.mxu1 %vm5803_vm0, %v5802_v1  ;;  %5470 = vmatpush3.msra.mxu1 %v4054_v14 }
0x11a8   : > { %5471 = vmatprep.subr.mxu1 %v5802_v1 }
0x11a9   : > { %5472 = vmatpush3.msra.mxu1 %v4053_v15 }
0x11aa   : > { %5473 = vmatprep.subr.mxu1 %v5802_v1 }
0x11ab   : > { %5474 = vmatpush3.msra.mxu1 %v4052_v16 }
0x11ac   : > { %5475 = vmatprep.subr.mxu1 %v5802_v1 }
0x11ad   : > { %5476 = vmatpush3.msra.mxu1 %v4051_v33 }
0x11ae   : > { %5477 = vmatprep.subr.mxu1 %v5802_v1 }
0x11af   : > { %5478 = vmatpush3.msra.mxu1 %v4050_v34 }
0x11b0   : > { %5479 = vmatprep.subr.mxu1 %v5802_v1 }
0x11b1   : > { %5480 = vmatpush3.msra.mxu1 %v4049_v9 }
0x11b2   : > { %5481 = vmatprep.subr.mxu1 %v5802_v1 }
0x11b3   : > { %5482 = vmatpush3.msra.mxu1 %v4048_v35 }
0x11b4   : > { %5483 = vmatprep.subr.mxu1 %v5802_v1 }
0x11b5   : > { %5484 = vmatpush3.msra.mxu1 %v4047_v36 }
0x11b6   : > { %5485 = vmatprep.subr.mxu1 %v5802_v1 }
0x11b7   : > { %5486 = vmatpush3.msra.mxu1 %v4046_v37 }
0x11b8   : > { %5487 = vmatprep.subr.mxu1 %v5802_v1 }
0x11b9   : > { %5488 = vmatpush3.msra.mxu1 %v4045_v38 }
0x11ba   : > { %5489 = vmatprep.subr.mxu1 %v5802_v1 }
0x11bb   : > { %5490 = vmatpush3.msra.mxu1 %v4044_v39 }
0x11bc   : > { %5491 = vmatprep.subr.mxu1 %v5802_v1 }
0x11bd   : > { %5492 = vmatpush3.msra.mxu1 %v4043_v40 }
0x11be   : > { %5493 = vmatprep.subr.mxu1 %v5802_v1 }
0x11bf   : > { %5494 = vmatpush3.msra.mxu1 %v4042_v41 }
0x11c0   : > { %5495 = vmatprep.subr.mxu1 %v5802_v1 }
0x11c1   : > { %5496 = vmatpush3.msra.mxu1 %v4041_v20 }
0x11c2   : > { %5497 = vmatprep.subr.mxu1 %v5802_v1 }
0x11c3   : > { %5498 = vmatpush3.msra.mxu1 %v4040_v21 }
0x11c4   : > { %5499 = vmatprep.subr.mxu1 %v5802_v1 }
0x11c5   : > { %5500 = vmatpush3.msra.mxu1 %v4039_v22 }
0x1266   : > { %v3944_v43 = vpop.f32.mrf.mxu1 }
0x1267   : > { %v3948_v17 = vadd.f32 %v3944_v43, %v3874_v42 }
0x1268   : > { %v5449_v18 = vpop.f32.mrf.mxu1 }
0x1269   : > { %5627 = vtanh.f32 %v3948_v17 }
0x1276   : > { %v5628_v19 = vpop.eup %5627 }
0x1277   : > { %5467 = vmatmul.mubr.msk.f32.vlgmr.msra.gmra.mxu0 %vm564_vm3, %v5628_v19 }
0x1337   : > { %v4034_v24 = vpop.f32.mrf.mxu0 }
0x1338   : > { %v4035_v25 = vadd.f32 %v4311_v23, %v4034_v24 }
0x1339   : > { %v5468_v26 = vpop.f32.mrf.mxu0 }
0x133a   : > { %v4038_v27 = vmax.f32 %v4035_v25, 0.0 }
0x133c   : > { %5502 = vmatmul.mubr.f32.vlgmr.msra.gmra.mxu1 %v4038_v27 }
0x13fc   : > { %v4128_v1 = vpop.f32.mrf.mxu1 }
0x13fd   : > { %v4129_v29 = vadd.f32 %v4313_v28, %v4128_v1 }
0x13fe   : > { %v5503_v44 = vpop.f32.mrf.mxu1 }
0x13ff   : > { %4133 = vst.msk [vmem:[%s449_s29] sm:$0xff] %vm4132_vm4, %v4129_v29 }
0x1400 PF: > { %s7111_s1 = sld [smem:[#allocation14_spill]]  ;;  %p25_p4 = scmp.ge.s32.totalorder %s5889_s23, 4  }
0x1401   : > { %s7112_s19 = smov %s5785_s20  ;;  %s7113_s20 = smov %s5789_s21 }
0x1402   : > { %s7115_s22 = smov %s5889_s23  ;;  %27 = sbr.rel (!%p25_p4) target bundleno = 8 (0x8), region = 138 }
0x1406   : > { %s7114_s21 = smov %s7111_s1 }
0x1407   :  { %4153 = vsyncpa [#allocation5], 1 }
0x1408   :  { %4155 = vsyncpa [#allocation5 + $0x1], 1 }
0x1409   :  { %4156 = vsyncpa [#allocation7], 1 }
0x140a   :  { %4157 = vsyncpa [#allocation10], 1 }

</bundles_post_ra>
